<compile_context>
chip_gen: v7x
topology: tpu7x:2x2x1
jax: 0.10.0
libtpu: 0.0.40
codegen_flags: <defaults>
</compile_context>

<pallas_src>
import jax
import jax.numpy as jnp
from jax.experimental import pallas as pl
from jax.experimental.pallas import tpu as pltpu


def _round_up(n, m):
    return ((n + m - 1) // m) * m


def _tpu_vmem_capacity_bytes():
    """Best-effort VMEM capacity query; conservative (v7x-sized) fallback."""
    try:
        info = pltpu.get_tpu_info()
        cap = getattr(info, "vmem_capacity_bytes", None)
        if cap:
            return int(cap)
    except Exception:
        pass
    return 64 * 1024 * 1024


def _nonlocal_kernel(x_ref, phi_t_ref, g_ref,
                     w_th_ref, b_th_ref, w_o_ref, b_o_ref,
                     o_ref):
    x = x_ref[0]                                              # (TN, C) f32
    xb = x.astype(jnp.bfloat16)

    # theta projection (softmax scale pre-folded into w_theta / b_theta)
    theta = jnp.dot(xb, w_th_ref[...],
                    preferred_element_type=jnp.float32) + b_th_ref[...]

    # attention scores over pooled positions; softmax elementwise math in f32
    s = jnp.dot(theta.astype(jnp.bfloat16), phi_t_ref[0],
                preferred_element_type=jnp.float32)           # (TN, Np)
    s = s - jnp.max(s, axis=-1, keepdims=True)
    p = jnp.exp(s)
    inv_l = pl.reciprocal(jnp.sum(p, axis=-1, keepdims=True), approx=True)

    # t = softmax(s) @ g, with the 1/l normalization folded in AFTER the matmul
    t = jnp.dot(p.astype(jnp.bfloat16), g_ref[0],
                preferred_element_type=jnp.float32) * inv_l   # (TN, Dp)

    # output projection (inference BatchNorm folded in) + f32 residual
    out = jnp.dot(t.astype(jnp.bfloat16), w_o_ref[...],
                  preferred_element_type=jnp.float32) + b_o_ref[...]
    o_ref[0] = out + x


def nonlocal_block(x, params, *, eps=1e-5):
    """x: (B, C, T, H, W) float32; returns (B, C, T, H, W)."""
    B, C, T, H, W = x.shape
    D = params["w_theta"].shape[0]
    C_out = params["w_out"].shape[0]
    assert C_out == C, "residual add requires dim_out == dim_in"
    assert H % 2 == 0 and W % 2 == 0
    Hp, Wp = H // 2, W // 2
    N, Np = T * H * W, T * Hp * Wp

    f32, bf16 = jnp.float32, jnp.bfloat16
    alpha = float(D) ** -0.5
    Dp = _round_up(D, 128)

    # generation-aware query tile and VMEM budget
    big_vmem = _tpu_vmem_capacity_bytes() >= 100 * 1024 * 1024
    tn_target = 512 if big_vmem else 256
    vmem_limit = (96 if big_vmem else 48) * 1024 * 1024
    TN = tn_target if N >= tn_target else _round_up(N, 8)
    Npad = _round_up(N, TN)

    # ---- host-side parameter prep (inner dim padded to Dp, channels NOT padded)
    w_th = jnp.pad(params["w_theta"].T.astype(f32) * alpha,
                   ((0, 0), (0, Dp - D))).astype(bf16)                 # (C, Dp)
    b_th = jnp.pad(params["b_theta"].astype(f32) * alpha,
                   (0, Dp - D)).reshape(1, Dp)                         # (1, Dp)
    inv_std = 1.0 / jnp.sqrt(params["bn_var"].astype(f32) + eps)
    bn_scale = params["bn_gamma"].astype(f32) * inv_std                # (C,)
    w_o = jnp.pad(params["w_out"].T.astype(f32) * bn_scale[None, :],
                  ((0, Dp - D), (0, 0))).astype(bf16)                  # (Dp, C)
    b_o = ((params["b_out"].astype(f32) - params["bn_mean"].astype(f32))
           * bn_scale + params["bn_beta"].astype(f32)).reshape(1, C)   # (1, C)

    # ---- XLA prologue: MaxPool3d((1,2,2)) + phi/g 1x1x1 convs, emitted directly
    # in the layouts the kernel consumes (phi already transposed; bf16).
    mp = x.reshape(B, C, T, Hp, 2, Wp, 2).max(axis=(4, 6)).reshape(B, C, Np)
    phi_t = jnp.einsum("dc,bcm->bdm", params["w_phi"].astype(f32), mp) \
        + params["b_phi"].astype(f32)[None, :, None]                   # (B, D, Np)
    g = jnp.einsum("dc,bcm->bmd", params["w_g"].astype(f32), mp) \
        + params["b_g"].astype(f32)[None, None, :]                     # (B, Np, D)
    phi_t = jnp.pad(phi_t, ((0, 0), (0, Dp - D), (0, 0))).astype(bf16)  # (B, Dp, Np)
    g = jnp.pad(g, ((0, 0), (0, 0), (0, Dp - D))).astype(bf16)          # (B, Np, Dp)

    # channels-last query layout, N padded up to a multiple of TN (zero rows)
    x_flat = jnp.transpose(x.reshape(B, C, N), (0, 2, 1)).astype(f32)
    if Npad != N:
        x_flat = jnp.pad(x_flat, ((0, 0), (0, Npad - N), (0, 0)))

    def const_spec(a):
        shp = a.shape
        return pl.BlockSpec(shp, lambda b, j: (0,) * len(shp))

    out = pl.pallas_call(
        _nonlocal_kernel,
        out_shape=jax.ShapeDtypeStruct((B, Npad, C), f32),
        grid_spec=pltpu.PrefetchScalarGridSpec(
            num_scalar_prefetch=0,
            grid=(B, Npad // TN),
            in_specs=[
                pl.BlockSpec((1, TN, C), lambda b, j: (b, j, 0)),   # x tile
                pl.BlockSpec((1, Dp, Np), lambda b, j: (b, 0, 0)),  # phi^T, resident
                pl.BlockSpec((1, Np, Dp), lambda b, j: (b, 0, 0)),  # g, resident
                const_spec(w_th), const_spec(b_th),
                const_spec(w_o), const_spec(b_o),
            ],
            out_specs=pl.BlockSpec((1, TN, C), lambda b, j: (b, j, 0)),
        ),
        compiler_params=pltpu.CompilerParams(
            # no cross-tile carried state anymore -> both axes parallel
            # (fills both TensorCores on v7x even when B is small).
            dimension_semantics=("parallel", "parallel"),
            vmem_limit_bytes=vmem_limit,
        ),
    )(x_flat, phi_t, g, w_th, b_th, w_o, b_o)

    out = out[:, :N, :]                                   # drop N padding
    return jnp.transpose(out, (0, 2, 1)).reshape(B, C_out, T, H, W)


def _reference(x, params, eps=1e-5):
    """Pure-JAX f32 reference mirroring the PyTorch forward (inference BN)."""
    B, C, T, H, W = x.shape
    dim_inner = params["w_theta"].shape[0]
    mp = x.reshape(B, C, T, H // 2, 2, W // 2, 2).max(axis=(4, 6))
    conv = lambda inp, w, b: jnp.einsum("bcn,oc->bon", inp, w) + b[None, :, None]
    x_f = x.reshape(B, C, -1)
    mp_f = mp.reshape(B, C, -1)
    theta = conv(x_f, params["w_theta"], params["b_theta"])
    phi = conv(mp_f, params["w_phi"], params["b_phi"])
    g = conv(mp_f, params["w_g"], params["b_g"])
    s = jnp.einsum("bin,bim->bnm", theta, phi) * dim_inner ** -0.5
    p = jax.nn.softmax(s, axis=-1)
    t = jnp.einsum("bim,bnm->bin", g, p)
    out = conv(t, params["w_out"], params["b_out"])
    bnm = params["bn_mean"][None, :, None]
    bnv = params["bn_var"][None, :, None]
    out = (out - bnm) / jnp.sqrt(bnv + eps) * params["bn_gamma"][None, :, None] \
        + params["bn_beta"][None, :, None]
    return out.reshape(B, -1, T, H, W) + x


if __name__ == "__main__":
    # small shapes consistent with the module (N = 512, Np = 128)
    B, C_in, T, H, W = 2, 8, 2, 16, 16
    dim_inner, dim_out = 4, 8  # dim_out == dim_in (residual add)

    key = jax.random.PRNGKey(0)
    ks = jax.random.split(key, 12)
    f32 = jnp.float32

    params = {
        "w_theta": 0.1 * jax.random.normal(ks[0], (dim_inner, C_in), f32),
        "b_theta": 0.1 * jax.random.normal(ks[1], (dim_inner,), f32),
        "w_phi":   0.1 * jax.random.normal(ks[2], (dim_inner, C_in), f32),
        "b_phi":   0.1 * jax.random.normal(ks[3], (dim_inner,), f32),
        "w_g":     0.1 * jax.random.normal(ks[4], (dim_inner, C_in), f32),
        "b_g":     0.1 * jax.random.normal(ks[5], (dim_inner,), f32),
        "w_out":   0.1 * jax.random.normal(ks[6], (dim_out, dim_inner), f32),
        "b_out":   0.1 * jax.random.normal(ks[7], (dim_out,), f32),
        "bn_gamma": 1.0 + 0.1 * jax.random.normal(ks[8], (dim_out,), f32),
        "bn_beta":  0.1 * jax.random.normal(ks[9], (dim_out,), f32),
        "bn_mean":  0.1 * jax.random.normal(ks[10], (dim_out,), f32),
        "bn_var":   jax.random.uniform(ks[11], (dim_out,), f32, 0.5, 1.5),
    }

    x = jax.random.normal(jax.random.PRNGKey(42), (B, C_in, T, H, W), f32)

    fwd = jax.jit(nonlocal_block)   # fuses the XLA prologue/epilogue ops
    y = jax.block_until_ready(fwd(x, params))
    y_ref = jax.block_until_ready(_reference(x, params))

    assert y.shape == (B, dim_out, T, H, W)
    # tolerance accounts for bf16 MXU operands + approx reciprocal vs f32 ref
    err = float(jnp.abs(y - y_ref).max())
    assert jnp.allclose(y, y_ref, rtol=1e-2, atol=1e-2), err
    print("KERNEL_OK")
</pallas_src>

<mosaic_0001>
module attributes {stable_mosaic.version = 11 : i64} {
  func.func @_nonlocal_kernel(%arg0: i32, %arg1: i32, %arg2: memref<1x256x8xf32, #tpu.memory_space<vmem>>, %arg3: memref<1x128x128xbf16, #tpu.memory_space<vmem>>, %arg4: memref<1x128x128xbf16, #tpu.memory_space<vmem>>, %arg5: memref<8x128xbf16, #tpu.memory_space<vmem>>, %arg6: memref<1x128xf32, #tpu.memory_space<vmem>>, %arg7: memref<128x8xbf16, #tpu.memory_space<vmem>>, %arg8: memref<1x8xf32, #tpu.memory_space<vmem>>, %arg9: memref<1x256x8xf32, #tpu.memory_space<vmem>>) attributes {dimension_semantics = [#tpu.dimension_semantics<parallel>, #tpu.dimension_semantics<parallel>], iteration_bounds = array<i64: 2, 2>, scalar_prefetch = 0 : i64, scratch_operands = 0 : i64, tpu.core_type = #tpu.core_type<tc>, window_params = [{transform_indices = @transform_0, window_bounds = array<i64: 1, 256, 8>}, {transform_indices = @transform_1, window_bounds = array<i64: 1, 128, 128>}, {transform_indices = @transform_2, window_bounds = array<i64: 1, 128, 128>}, {pipeline_mode = #tpu.pipeline_mode<synchronous>, transform_indices = @transform_3, window_bounds = array<i64: 8, 128>}, {pipeline_mode = #tpu.pipeline_mode<synchronous>, transform_indices = @transform_4, window_bounds = array<i64: 1, 128>}, {pipeline_mode = #tpu.pipeline_mode<synchronous>, transform_indices = @transform_5, window_bounds = array<i64: 128, 8>}, {pipeline_mode = #tpu.pipeline_mode<synchronous>, transform_indices = @transform_6, window_bounds = array<i64: 1, 8>}, {transform_indices = @transform_7, window_bounds = array<i64: 1, 256, 8>}]} {
    %c0 = arith.constant 0 : index
    %c0_0 = arith.constant 0 : index
    %c0_1 = arith.constant 0 : index
    %0 = vector.load %arg2[%c0, %c0_0, %c0_1] : memref<1x256x8xf32, #tpu.memory_space<vmem>>, vector<1x256x8xf32>
    %1 = vector.shape_cast %0 : vector<1x256x8xf32> to vector<256x8xf32>
    %2 = arith.truncf %1 : vector<256x8xf32> to vector<256x8xbf16>
    %c0_2 = arith.constant 0 : index
    %c0_3 = arith.constant 0 : index
    %3 = vector.load %arg5[%c0_2, %c0_3] : memref<8x128xbf16, #tpu.memory_space<vmem>>, vector<8x128xbf16>
    %cst = arith.constant dense<0.000000e+00> : vector<256x128xf32>
    %4 = tpu.matmul %2, %3, %cst {dimension_numbers = #tpu.dot_dimension_numbers<[1], [0], [0], [1], [0, 0, 1, 1], [], []>} : vector<256x8xbf16>, vector<8x128xbf16>, vector<256x128xf32> -> vector<256x128xf32>
    %c0_4 = arith.constant 0 : index
    %c0_5 = arith.constant 0 : index
    %5 = vector.load %arg6[%c0_4, %c0_5] : memref<1x128xf32, #tpu.memory_space<vmem>>, vector<1x128xf32>
    %6 = vector.broadcast %5 : vector<1x128xf32> to vector<256x128xf32>
    %7 = arith.addf %4, %6 : vector<256x128xf32>
    %8 = arith.truncf %7 : vector<256x128xf32> to vector<256x128xbf16>
    %c0_6 = arith.constant 0 : index
    %c0_7 = arith.constant 0 : index
    %c0_8 = arith.constant 0 : index
    %9 = vector.load %arg3[%c0_6, %c0_7, %c0_8] : memref<1x128x128xbf16, #tpu.memory_space<vmem>>, vector<1x128x128xbf16>
    %10 = vector.shape_cast %9 : vector<1x128x128xbf16> to vector<128x128xbf16>
    %cst_9 = arith.constant dense<0.000000e+00> : vector<256x128xf32>
    %11 = tpu.matmul %8, %10, %cst_9 {dimension_numbers = #tpu.dot_dimension_numbers<[1], [0], [0], [1], [0, 0, 1, 1], [], []>} : vector<256x128xbf16>, vector<128x128xbf16>, vector<256x128xf32> -> vector<256x128xf32>
    %cst_10 = arith.constant dense<0xFF800000> : vector<256xf32>
    %12 = vector.multi_reduction <maximumf>, %11, %cst_10 [1] : vector<256x128xf32> to vector<256xf32>
    %13 = vector.shape_cast %12 : vector<256xf32> to vector<256x1xf32>
    %14 = vector.broadcast %13 : vector<256x1xf32> to vector<256x128xf32>
    %15 = arith.subf %11, %14 : vector<256x128xf32>
    %16 = math.exp %15 : vector<256x128xf32>
    %cst_11 = arith.constant dense<0.000000e+00> : vector<256xf32>
    %17 = vector.multi_reduction <add>, %16, %cst_11 [1] : vector<256x128xf32> to vector<256xf32>
    %18 = vector.shape_cast %17 : vector<256xf32> to vector<256x1xf32>
    %19 = tpu.reciprocal %18 {approx = true} : vector<256x1xf32> -> vector<256x1xf32>
    %20 = arith.truncf %16 : vector<256x128xf32> to vector<256x128xbf16>
    %c0_12 = arith.constant 0 : index
    %c0_13 = arith.constant 0 : index
    %c0_14 = arith.constant 0 : index
    %21 = vector.load %arg4[%c0_12, %c0_13, %c0_14] : memref<1x128x128xbf16, #tpu.memory_space<vmem>>, vector<1x128x128xbf16>
    %22 = vector.shape_cast %21 : vector<1x128x128xbf16> to vector<128x128xbf16>
    %cst_15 = arith.constant dense<0.000000e+00> : vector<256x128xf32>
    %23 = tpu.matmul %20, %22, %cst_15 {dimension_numbers = #tpu.dot_dimension_numbers<[1], [0], [0], [1], [0, 0, 1, 1], [], []>} : vector<256x128xbf16>, vector<128x128xbf16>, vector<256x128xf32> -> vector<256x128xf32>
    %24 = vector.broadcast %19 : vector<256x1xf32> to vector<256x128xf32>
    %25 = arith.mulf %23, %24 : vector<256x128xf32>
    %26 = arith.truncf %25 : vector<256x128xf32> to vector<256x128xbf16>
    %c0_16 = arith.constant 0 : index
    %c0_17 = arith.constant 0 : index
    %27 = vector.load %arg7[%c0_16, %c0_17] : memref<128x8xbf16, #tpu.memory_space<vmem>>, vector<128x8xbf16>
    %cst_18 = arith.constant dense<0.000000e+00> : vector<256x8xf32>
    %28 = tpu.matmul %26, %27, %cst_18 {dimension_numbers = #tpu.dot_dimension_numbers<[1], [0], [0], [1], [0, 0, 1, 1], [], []>} : vector<256x128xbf16>, vector<128x8xbf16>, vector<256x8xf32> -> vector<256x8xf32>
    %c0_19 = arith.constant 0 : index
    %c0_20 = arith.constant 0 : index
    %29 = vector.load %arg8[%c0_19, %c0_20] : memref<1x8xf32, #tpu.memory_space<vmem>>, vector<1x8xf32>
    %30 = vector.broadcast %29 : vector<1x8xf32> to vector<256x8xf32>
    %31 = arith.addf %28, %30 : vector<256x8xf32>
    %32 = arith.addf %31, %1 : vector<256x8xf32>
    %c0_21 = arith.constant 0 : index
    %c0_22 = arith.constant 0 : index
    %c0_23 = arith.constant 0 : index
    %33 = vector.load %arg9[%c0_21, %c0_22, %c0_23] : memref<1x256x8xf32, #tpu.memory_space<vmem>>, vector<1x256x8xf32>
    %34 = vector.shape_cast %33 : vector<1x256x8xf32> to vector<256x8xf32>
    %35 = vector.shape_cast %32 : vector<256x8xf32> to vector<1x256x8xf32>
    tpu.vector_store %arg9[%c0_21, %c0_22, %c0_23], %35 {strides = array<i32>} : memref<1x256x8xf32, #tpu.memory_space<vmem>>, vector<1x256x8xf32>,
    return
  }
  func.func @transform_0(%arg0: i32, %arg1: i32) -> (i32, i32, i32) {
    %c0_i32 = arith.constant 0 : i32
    %c0_i32_0 = arith.constant 0 : i32
    return %arg0, %arg1, %c0_i32 : i32, i32, i32
  }
  func.func @transform_1(%arg0: i32, %arg1: i32) -> (i32, i32, i32) {
    %c0_i32 = arith.constant 0 : i32
    %c0_i32_0 = arith.constant 0 : i32
    %c0_i32_1 = arith.constant 0 : i32
    return %arg0, %c0_i32, %c0_i32_0 : i32, i32, i32
  }
  func.func @transform_2(%arg0: i32, %arg1: i32) -> (i32, i32, i32) {
    %c0_i32 = arith.constant 0 : i32
    %c0_i32_0 = arith.constant 0 : i32
    %c0_i32_1 = arith.constant 0 : i32
    return %arg0, %c0_i32, %c0_i32_0 : i32, i32, i32
  }
  func.func @transform_3(%arg0: i32, %arg1: i32) -> (i32, i32) {
    %c0_i32 = arith.constant 0 : i32
    %c0_i32_0 = arith.constant 0 : i32
    %c0_i32_1 = arith.constant 0 : i32
    return %c0_i32, %c0_i32_0 : i32, i32
  }
  func.func @transform_4(%arg0: i32, %arg1: i32) -> (i32, i32) {
    %c0_i32 = arith.constant 0 : i32
    %c0_i32_0 = arith.constant 0 : i32
    %c0_i32_1 = arith.constant 0 : i32
    return %c0_i32, %c0_i32_0 : i32, i32
  }
  func.func @transform_5(%arg0: i32, %arg1: i32) -> (i32, i32) {
    %c0_i32 = arith.constant 0 : i32
    %c0_i32_0 = arith.constant 0 : i32
    %c0_i32_1 = arith.constant 0 : i32
    return %c0_i32, %c0_i32_0 : i32, i32
  }
  func.func @transform_6(%arg0: i32, %arg1: i32) -> (i32, i32) {
    %c0_i32 = arith.constant 0 : i32
    %c0_i32_0 = arith.constant 0 : i32
    %c0_i32_1 = arith.constant 0 : i32
    return %c0_i32, %c0_i32_0 : i32, i32
  }
  func.func @transform_7(%arg0: i32, %arg1: i32) -> (i32, i32, i32) {
    %c0_i32 = arith.constant 0 : i32
    %c0_i32_0 = arith.constant 0 : i32
    return %arg0, %arg1, %c0_i32 : i32, i32, i32
  }
}

</mosaic_0001>

<bundles_post_ra>
// kernel: nonlocal_block.1
= control target key start
LH: loop header
LB: loop body
LE: loop exit
PB: predicated region body
PF: predicated region fallthrough
CT: control target
= control target key end

     0   :  { %s2474_s24 = smov 0   ;;  %s2476_s25 = smov 0   ;;  %s2984_s0 = inlined_call_operand.vmem [shape: f32[2,512,8], index: 0, kind: input, shape index: {}]   ;;  %s2985_s1 = inlined_call_operand.vmem [shape: bf16[2,128,128], index: 1, kind: input, shape index: {}]   ;;  %s2986_s2 = inlined_call_operand.vmem [shape: bf16[2,128,128], index: 2, kind: input, shape index: {}]   ;;  %s2987_s3 = inlined_call_operand.vmem [shape: bf16[8,128], index: 3, kind: input, shape index: {}]   ;;  %s2988_s4 = inlined_call_operand.vmem [shape: f32[1,128], index: 4, kind: input, shape index: {}]   ;;  %s2989_s5 = inlined_call_operand.vmem [shape: bf16[128,8], index: 5, kind: input, shape index: {}]   ;;  %s2990_s6 = inlined_call_operand.vmem [shape: f32[1,8], index: 6, kind: input, shape index: {}]   ;;  %s2991_s7 = inlined_call_operand.vmem [shape: f32[2,512,8], index: 7, kind: output, shape index: {}]  }
   0x1   :  { %s2478_s26 = smov 0   ;;  %s2480_s27 = smov 0  }
   0x2   :  { %s2482_s28 = smov 0  }
   0x3 LB: > { %s26_s29 = sadd.s32 1, %s2424_s26  ;;  %s29_s30 = sadd.s32 1, %s2428_s27  ;;  %s2432_s28 = sphi %s2482_s28, %s17_s28   ;;  %s2428_s27 = sphi %s2480_s27, %s2995_s27   ;;  %s2424_s26 = sphi %s2478_s26, %s2994_s26   ;;  %s2420_s25 = sphi %s2476_s25, %s2993_s25   ;;  %s2416_s24 = sphi %s2474_s24, %s2992_s24  }
   0x4   : > { %p27_p0 = scmp.ge.s32.totalorder %s26_s29, 2  ;;  %p1829_p1 = scmp.ge.s32.totalorder %s2432_s28, 1 }
   0x5   : > { %p278_p2 = scmp.lt.s32.totalorder %s2432_s28, 5 }
   0x6   : > { %s2997_s29 = smov (%p27_p0, %s26_s29), 0  ;;  %s2999_s30 = smov (!%p27_p0, %s29_s30), %s2428_s27 }
   0x7   : > { %p279_p3 = pnand %p1829_p1, %p278_p2  ;;  %p31_p4 = scmp.ge.s32.totalorder %s2999_s30, 2 }
   0x8   : > { %v407_v0 = vld [vmem:[%s2987_s3] sm:$0xf] (!%p279_p3)  ;;  %vm464_vm0 = vcmask (!%p279_p3), 1043456   ;;  %s1830_s10 = sshll.u32 (!%p279_p3), %s2416_s24, 5  ;;  %p329_p5 = scmp.lt.s32.totalorder (!%p279_p3), %s2420_s25, 1  ;;  %vm415_vm1 = vcmask (!%p279_p3), 64512  }
   0x9   : > { %s3001_s30 = smov (%p31_p4, %s2999_s30), 0  ;;  %282 = sbr.rel (%p279_p3) target bundleno = 1119 (0x45f), region = 48 }
   0xa   : > { %2169 = vmatprep.subr.msk.bf16.mxu0 (!%p279_p3), %vm464_vm0, %v407_v0  ;;  %v466_v1 = vsel (!%p279_p3), %vm464_vm0, %v407_v0, 0  ;;  %p331_p6 = scmp.lt.s32.totalorder (!%p279_p3), %s1830_s10, 63  ;;  %v2583_v59 = vld [vmem:[%s2988_s4] ss:$0 sm:$0xff] (!%p279_p3) }
   0xb   : > { %1976 = vmatpush3.bf16.msra.mxu0 (!%p279_p3), %v466_v1 }
  0x10   : > { %s3003_s25 = smov (!%p329_p5, %s2420_s25), 1  ;;  %s3005_s10 = smov (!%p331_p6, %s1830_s10), 63 }
  0x11   : > { %s2507_s11 = sshll.u32 %s3003_s25, 6 }
  0x12   : > { %s334_s12 = sadd.s32 %s2507_s11, %s3005_s10  ;;  %s2514_s15 = scalar_lea.vmem %s2985_s1, %s2507_s11 }
  0x13   : > { %s2516_s16 = sshll.u32 %s334_s12, 3  ;;  %v2210_v2 = vld [vmem:[%s2514_s15] sm:$0xff]   ;;  %v2211_v3 = vld [vmem:[%s2514_s15 + $0x8] sm:$0xff]   ;;  %v2212_v21 = vld [vmem:[%s2514_s15 + $0x10] sm:$0xff]   ;;  %s2621_s24 = scalar_lea.vmem %s2986_s2, %s2507_s11 }
  0x14   : > { %s2523_s19 = scalar_lea.vmem %s2984_s0, %s2516_s16  ;;  %2009 = vmatprep.subr.bf16.mxu1 %v2210_v2  ;;  %v2213_v23 = vld [vmem:[%s2514_s15 + $0x18] sm:$0xff]   ;;  %v2214_v25 = vld [vmem:[%s2514_s15 + $0x20] sm:$0xff]   ;;  %v2215_v28 = vld [vmem:[%s2514_s15 + $0x28] sm:$0xff]   ;;  %s2840_s11 = scalar_lea.vmem %s2991_s7, %s2516_s16 }
  0x15   : > { %v359_v4 = vld [vmem:[%s2523_s19] sm:$0xff]  ;;  %v360_v5 = vld [vmem:[%s2523_s19 + $0x8] sm:$0xff]  ;;  %v361_v6 = vld [vmem:[%s2523_s19 + $0x10] sm:$0xff]  ;;  %2010 = vmatpush3.bf16.msra.mxu1 %v2210_v2 }
  0x16   : > { %v391_v7 = vpack.c.bf16 %v360_v5, %v359_v4  ;;  %v362_v8 = vld [vmem:[%s2523_s19 + $0x18] sm:$0xff]  ;;  %v363_v9 = vld [vmem:[%s2523_s19 + $0x20] sm:$0xff]  ;;  %v364_v10 = vld [vmem:[%s2523_s19 + $0x28] sm:$0xff]  ;;  %2011 = vmatprep.subr.bf16.mxu1 %v2211_v3 }
  0x17   : > { %v392_v11 = vpack.c.bf16 %v362_v8, %v361_v6  ;;  %v393_v12 = vpack.c.bf16 %v364_v10, %v363_v9  ;;  %v365_v13 = vld [vmem:[%s2523_s19 + $0x30] sm:$0xff]  ;;  %v366_v14 = vld [vmem:[%s2523_s19 + $0x38] sm:$0xff]  ;;  %v367_v15 = vld [vmem:[%s2523_s19 + $0x40] sm:$0xff] }
  0x18   : > { %1977 = vmatprep.mubr.msk.bf16.mxu0 %vm415_vm1, %v391_v7  ;;  %v368_v16 = vld [vmem:[%s2523_s19 + $0x48] sm:$0xff]  ;;  %v394_v17 = vpack.c.bf16 %v366_v14, %v365_v13  ;;  %v369_v19 = vld [vmem:[%s2523_s19 + $0x50] sm:$0xff]  ;;  %v370_v20 = vld [vmem:[%s2523_s19 + $0x58] sm:$0xff] }
  0x19   : > { %1978 = vmatmul.mubr.msk.bf16.vlgmr.msra.gmra.mrb[0].mxu0 %vm415_vm1, %v392_v11  ;;  %2012 = vmatpush3.bf16.msra.mxu1 %v2211_v3  ;;  %v395_v18 = vpack.c.bf16 %v368_v16, %v367_v15  ;;  %v371_v22 = vld [vmem:[%s2523_s19 + $0x60] sm:$0xff]  ;;  %v372_v24 = vld [vmem:[%s2523_s19 + $0x68] sm:$0xff]  ;;  %v396_v26 = vpack.c.bf16 %v370_v20, %v369_v19  ;;  %v373_v29 = vld [vmem:[%s2523_s19 + $0x70] sm:$0xff] }
  0x1a   : > { %1981 = vmatprep.mubr.msk.bf16.mxu0 %vm415_vm1, %v393_v12  ;;  %2013 = vmatprep.subr.bf16.mxu1 %v2212_v21  ;;  %v397_v27 = vpack.c.bf16 %v372_v24, %v371_v22  ;;  %v374_v30 = vld [vmem:[%s2523_s19 + $0x78] sm:$0xff]  ;;  %v375_v31 = vld [vmem:[%s2523_s19 + $0x80] sm:$0xff]  ;;  %v376_v32 = vld [vmem:[%s2523_s19 + $0x88] sm:$0xff] }
  0x1b   : > { %v398_v33 = vpack.c.bf16 %v374_v30, %v373_v29  ;;  %v399_v34 = vpack.c.bf16 %v376_v32, %v375_v31  ;;  %v377_v35 = vld [vmem:[%s2523_s19 + $0x90] sm:$0xff]  ;;  %v378_v36 = vld [vmem:[%s2523_s19 + $0x98] sm:$0xff]  ;;  %v379_v37 = vld [vmem:[%s2523_s19 + $0xa0] sm:$0xff] }
  0x1c   : > { %v380_v38 = vld [vmem:[%s2523_s19 + $0xa8] sm:$0xff]  ;;  %v400_v39 = vpack.c.bf16 %v378_v36, %v377_v35  ;;  %v381_v41 = vld [vmem:[%s2523_s19 + $0xb0] sm:$0xff]  ;;  %v382_v42 = vld [vmem:[%s2523_s19 + $0xb8] sm:$0xff] }
  0x1d   : > { %2014 = vmatpush3.bf16.msra.mxu1 %v2212_v21  ;;  %v401_v40 = vpack.c.bf16 %v380_v38, %v379_v37  ;;  %v383_v43 = vld [vmem:[%s2523_s19 + $0xc0] sm:$0xff]  ;;  %v384_v44 = vld [vmem:[%s2523_s19 + $0xc8] sm:$0xff]  ;;  %v402_v45 = vpack.c.bf16 %v382_v42, %v381_v41  ;;  %v385_v47 = vld [vmem:[%s2523_s19 + $0xd0] sm:$0xff] }
  0x1e   : > { %2015 = vmatprep.subr.bf16.mxu1 %v2213_v23  ;;  %v403_v46 = vpack.c.bf16 %v384_v44, %v383_v43  ;;  %v386_v48 = vld [vmem:[%s2523_s19 + $0xd8] sm:$0xff]  ;;  %v387_v49 = vld [vmem:[%s2523_s19 + $0xe0] sm:$0xff]  ;;  %v388_v50 = vld [vmem:[%s2523_s19 + $0xe8] sm:$0xff] }
  0x1f   : > { %v404_v51 = vpack.c.bf16 %v386_v48, %v385_v47  ;;  %v405_v52 = vpack.c.bf16 %v388_v50, %v387_v49  ;;  %v389_v53 = vld [vmem:[%s2523_s19 + $0xf0] sm:$0xff]  ;;  %v390_v54 = vld [vmem:[%s2523_s19 + $0xf8] sm:$0xff] }
  0x20   : > { %v406_v55 = vpack.c.bf16 %v390_v54, %v389_v53  ;;  %v2216_v56 = vld [vmem:[%s2514_s15 + $0x30] sm:$0xff]   ;;  %v2217_v57 = vld [vmem:[%s2514_s15 + $0x38] sm:$0xff]  }
  0x21   : > { %1982 = vmatmul.mubr.msk.bf16.gmra.mrb[4].mxu0 %vm415_vm1, %v394_v17  ;;  %2016 = vmatpush3.bf16.msra.mxu1 %v2213_v23 }
  0x22   : > { %1985 = vmatprep.mubr.msk.bf16.mxu0 %vm415_vm1, %v395_v18  ;;  %2017 = vmatprep.subr.bf16.mxu1 %v2214_v25 }
  0x25   : > { %2018 = vmatpush3.bf16.msra.mxu1 %v2214_v25 }
  0x26   : > { %2019 = vmatprep.subr.bf16.mxu1 %v2215_v28 }
  0x29   : > { %1986 = vmatmul.mubr.msk.bf16.gmra.mrb[8].mxu0 %vm415_vm1, %v396_v26  ;;  %2020 = vmatpush3.bf16.msra.mxu1 %v2215_v28 }
  0x2a   : > { %1989 = vmatprep.mubr.msk.bf16.mxu0 %vm415_vm1, %v397_v27  ;;  %2021 = vmatprep.subr.bf16.mxu1 %v2216_v56 }
  0x2d   : > { %2022 = vmatpush3.bf16.msra.mxu1 %v2216_v56 }
  0x2e   : > { %2023 = vmatprep.subr.bf16.mxu1 %v2217_v57 }
  0x31   : > { %1990 = vmatmul.mubr.msk.bf16.gmra.mrb[12].mxu0 %vm415_vm1, %v398_v33  ;;  %2024 = vmatpush3.bf16.msra.mxu1 %v2217_v57 }
  0x32   : > { %1993 = vmatprep.mubr.msk.bf16.mxu0 %vm415_vm1, %v399_v34 }
  0x39   : > { %1994 = vmatmul.mubr.msk.bf16.gmra.mrb[16].mxu0 %vm415_vm1, %v400_v39 }
  0x3a   : > { %1997 = vmatprep.mubr.msk.bf16.mxu0 %vm415_vm1, %v401_v40 }
  0x41   : > { %1998 = vmatmul.mubr.msk.bf16.gmra.mrb[20].mxu0 %vm415_vm1, %v402_v45 }
  0x42   : > { %2001 = vmatprep.mubr.msk.bf16.mxu0 %vm415_vm1, %v403_v46 }
  0x49   : > { %2002 = vmatmul.mubr.msk.bf16.gmra.mrb[24].mxu0 %vm415_vm1, %v404_v51 }
  0x4a   : > { %2005 = vmatprep.mubr.msk.bf16.mxu0 %vm415_vm1, %v405_v52 }
  0x51   : > { %2006 = vmatmul.mubr.msk.bf16.gmra.mrb[28].mxu0 %vm415_vm1, %v406_v55 }
  0xec   : > { %v1979_v58 = vpop.f32.mrb[0].mxu0 }
  0xed   : > { %v502_v60 = vpop.f32.mrb[1].mxu0  ;;  %v511_v62 = vadd.f32 %v1979_v58, %v2583_v59 }
  0xee   : > { %v1980_v61 = vpop.f32.mrb[2].mxu0  ;;  %v503_v1 = vadd.f32 %v2583_v59, %v502_v60 }
  0xef   : > { %v514_v63 = vadd.f32 %v1980_v61, %v2583_v59  ;;  %v505_v0 = vpop.f32.mrb[3].mxu0 }
  0xf0   : > { %v506_v2 = vadd.f32 %v2583_v59, %v505_v0 }
  0xf1   : > { %v630_v3 = vpack.c.bf16 %v514_v63, %v511_v62 }
  0xf2   : > { %v629_v4 = vpack.c.bf16 %v506_v2, %v503_v1 }
  0xf4   : > { %v1983_v5 = vpop.f32.mrb[4].mxu0  ;;  %2025 = vmatprep.mubr.bf16.mxu1 %v629_v4 }
  0xf5   : > { %v518_v6 = vpop.f32.mrb[5].mxu0  ;;  %2026 = vmatmul.mubr.bf16.vlgmr.msra.gmra.mrb[0].mxu1 %v630_v3  ;;  %v527_v8 = vadd.f32 %v1983_v5, %v2583_v59 }
  0xf6   : > { %v1984_v7 = vpop.f32.mrb[6].mxu0  ;;  %v519_v11 = vadd.f32 %v2583_v59, %v518_v6 }
  0xf7   : > { %v530_v9 = vadd.f32 %v1984_v7, %v2583_v59  ;;  %v521_v10 = vpop.f32.mrb[7].mxu0 }
  0xf8   : > { %v522_v12 = vadd.f32 %v2583_v59, %v521_v10 }
  0xf9   : > { %v632_v13 = vpack.c.bf16 %v530_v9, %v527_v8 }
  0xfa   : > { %v631_v14 = vpack.c.bf16 %v522_v12, %v519_v11  ;;  %v2218_v12 = vld [vmem:[%s2621_s24] sm:$0xff]  }
  0xfb   : > { %2057 = vmatprep.subr.bf16.mxu0 %v2218_v12 }
  0xfc   : > { %v1987_v15 = vpop.f32.mrb[8].mxu0  ;;  %2029 = vmatprep.mubr.bf16.mxu1 %v631_v14  ;;  %2058 = vmatpush3.bf16.msra.mxu0 %v2218_v12  ;;  %v2221_v14 = vld [vmem:[%s2621_s24 + $0x18] sm:$0xff]  }
  0xfd   : > { %v534_v16 = vpop.f32.mrb[9].mxu0  ;;  %2030 = vmatmul.mubr.bf16.gmra.mrb[4].mxu1 %v632_v13  ;;  %v543_v18 = vadd.f32 %v1987_v15, %v2583_v59  ;;  %v2219_v13 = vld [vmem:[%s2621_s24 + $0x8] sm:$0xff]   ;;  %v2222_v15 = vld [vmem:[%s2621_s24 + $0x20] sm:$0xff]  }
  0xfe   : > { %v1988_v17 = vpop.f32.mrb[10].mxu0  ;;  %v535_v21 = vadd.f32 %v2583_v59, %v534_v16  ;;  %2059 = vmatprep.subr.bf16.mxu0 %v2219_v13  ;;  %v2223_v16 = vld [vmem:[%s2621_s24 + $0x28] sm:$0xff]  }
  0xff   : > { %v546_v19 = vadd.f32 %v1988_v17, %v2583_v59  ;;  %v537_v20 = vpop.f32.mrb[11].mxu0 }
 0x100   : > { %v538_v22 = vadd.f32 %v2583_v59, %v537_v20  ;;  %2060 = vmatpush3.bf16.msra.mxu0 %v2219_v13 }
 0x101   : > { %v634_v23 = vpack.c.bf16 %v546_v19, %v543_v18 }
 0x102   : > { %v633_v24 = vpack.c.bf16 %v538_v22, %v535_v21 }
 0x104   : > { %v1991_v25 = vpop.f32.mrb[12].mxu0  ;;  %2033 = vmatprep.mubr.bf16.mxu1 %v633_v24 }
 0x105   : > { %v550_v26 = vpop.f32.mrb[13].mxu0  ;;  %2034 = vmatmul.mubr.bf16.gmra.mrb[8].mxu1 %v634_v23  ;;  %v559_v28 = vadd.f32 %v1991_v25, %v2583_v59 }
 0x106   : > { %v1992_v27 = vpop.f32.mrb[14].mxu0  ;;  %v551_v31 = vadd.f32 %v2583_v59, %v550_v26 }
 0x107   : > { %v562_v29 = vadd.f32 %v1992_v27, %v2583_v59  ;;  %v553_v30 = vpop.f32.mrb[15].mxu0 }
 0x108   : > { %v554_v32 = vadd.f32 %v2583_v59, %v553_v30  ;;  %v2224_v30 = vld [vmem:[%s2621_s24 + $0x30] sm:$0xff]  }
 0x109   : > { %v636_v33 = vpack.c.bf16 %v562_v29, %v559_v28 }
 0x10a   : > { %v635_v34 = vpack.c.bf16 %v554_v32, %v551_v31 }
 0x10c   : > { %v1995_v35 = vpop.f32.mrb[16].mxu0  ;;  %2037 = vmatprep.mubr.bf16.mxu1 %v635_v34 }
 0x10d   : > { %v566_v36 = vpop.f32.mrb[17].mxu0  ;;  %2038 = vmatmul.mubr.bf16.gmra.mrb[12].mxu1 %v636_v33  ;;  %v575_v38 = vadd.f32 %v1995_v35, %v2583_v59  ;;  %v2225_v35 = vld [vmem:[%s2621_s24 + $0x38] sm:$0xff]  }
 0x10e   : > { %v1996_v37 = vpop.f32.mrb[18].mxu0  ;;  %v567_v41 = vadd.f32 %v2583_v59, %v566_v36 }
 0x10f   : > { %v578_v39 = vadd.f32 %v1996_v37, %v2583_v59  ;;  %v569_v40 = vpop.f32.mrb[19].mxu0 }
 0x110   : > { %v570_v42 = vadd.f32 %v2583_v59, %v569_v40 }
 0x111   : > { %v638_v43 = vpack.c.bf16 %v578_v39, %v575_v38 }
 0x112   : > { %v637_v44 = vpack.c.bf16 %v570_v42, %v567_v41 }
 0x114   : > { %v1999_v45 = vpop.f32.mrb[20].mxu0  ;;  %2041 = vmatprep.mubr.bf16.mxu1 %v637_v44 }
 0x115   : > { %v582_v46 = vpop.f32.mrb[21].mxu0  ;;  %2042 = vmatmul.mubr.bf16.gmra.mrb[16].mxu1 %v638_v43  ;;  %v591_v48 = vadd.f32 %v1999_v45, %v2583_v59 }
 0x116   : > { %v2000_v47 = vpop.f32.mrb[22].mxu0  ;;  %v583_v51 = vadd.f32 %v2583_v59, %v582_v46 }
 0x117   : > { %v594_v49 = vadd.f32 %v2000_v47, %v2583_v59  ;;  %v585_v50 = vpop.f32.mrb[23].mxu0 }
 0x118   : > { %v586_v52 = vadd.f32 %v2583_v59, %v585_v50 }
 0x119   : > { %v640_v53 = vpack.c.bf16 %v594_v49, %v591_v48 }
 0x11a   : > { %v639_v54 = vpack.c.bf16 %v586_v52, %v583_v51 }
 0x11c   : > { %v2003_v55 = vpop.f32.mrb[24].mxu0  ;;  %2045 = vmatprep.mubr.bf16.mxu1 %v639_v54 }
 0x11d   : > { %v598_v56 = vpop.f32.mrb[25].mxu0  ;;  %2046 = vmatmul.mubr.bf16.gmra.mrb[20].mxu1 %v640_v53  ;;  %v607_v58 = vadd.f32 %v2003_v55, %v2583_v59 }
 0x11e   : > { %v2004_v57 = vpop.f32.mrb[26].mxu0  ;;  %v599_v62 = vadd.f32 %v2583_v59, %v598_v56 }
 0x11f   : > { %v610_v60 = vadd.f32 %v2004_v57, %v2583_v59  ;;  %v601_v61 = vpop.f32.mrb[27].mxu0 }
 0x120   : > { %v602_v63 = vadd.f32 %v2583_v59, %v601_v61 }
 0x121   : > { %v642_v0 = vpack.c.bf16 %v610_v60, %v607_v58 }
 0x122   : > { %v641_v1 = vpack.c.bf16 %v602_v63, %v599_v62 }
 0x124   : > { %v2007_v2 = vpop.f32.mrb[28].mxu0  ;;  %2049 = vmatprep.mubr.bf16.mxu1 %v641_v1 }
 0x125   : > { %v614_v3 = vpop.f32.mrb[29].mxu0  ;;  %2050 = vmatmul.mubr.bf16.gmra.mrb[24].mxu1 %v642_v0  ;;  %v623_v5 = vadd.f32 %v2007_v2, %v2583_v59 }
 0x126   : > { %v2008_v4 = vpop.f32.mrb[30].mxu0  ;;  %v615_v8 = vadd.f32 %v2583_v59, %v614_v3 }
 0x127   : > { %v626_v6 = vadd.f32 %v2008_v4, %v2583_v59  ;;  %v617_v7 = vpop.f32.mrb[31].mxu0 }
 0x128   : > { %v618_v9 = vadd.f32 %v2583_v59, %v617_v7  ;;  %v2220_v59 = vld [vmem:[%s2621_s24 + $0x10] sm:$0xff]  }
 0x129   : > { %v644_v10 = vpack.c.bf16 %v626_v6, %v623_v5  ;;  %2061 = vmatprep.subr.bf16.mxu0 %v2220_v59 }
 0x12a   : > { %v643_v11 = vpack.c.bf16 %v618_v9, %v615_v8  ;;  %2062 = vmatpush3.bf16.msra.mxu0 %v2220_v59 }
 0x12b   : > { %2063 = vmatprep.subr.bf16.mxu0 %v2221_v14 }
 0x12c   : > { %2053 = vmatprep.mubr.bf16.mxu1 %v643_v11 }
 0x12d   : > { %2054 = vmatmul.mubr.bf16.gmra.mrb[28].mxu1 %v644_v10 }
 0x12e   : > { %2064 = vmatpush3.bf16.msra.mxu0 %v2221_v14 }
 0x12f   : > { %2065 = vmatprep.subr.bf16.mxu0 %v2222_v15 }
 0x132   : > { %2066 = vmatpush3.bf16.msra.mxu0 %v2222_v15 }
 0x133   : > { %2067 = vmatprep.subr.bf16.mxu0 %v2223_v16 }
 0x136   : > { %2068 = vmatpush3.bf16.msra.mxu0 %v2223_v16 }
 0x137   : > { %2069 = vmatprep.subr.bf16.mxu0 %v2224_v30 }
 0x13a   : > { %2070 = vmatpush3.bf16.msra.mxu0 %v2224_v30 }
 0x13b   : > { %2071 = vmatprep.subr.bf16.mxu0 %v2225_v35 }
 0x13e   : > { %2072 = vmatpush3.bf16.msra.mxu0 %v2225_v35 }
 0x1c8   : > { %v2629_v17 = vpop.f32.mrb[0].mxu1 }
 0x1c9   : > { %874 = vmax.xlane.f32.xlu1 %v2629_v17  ;;  %v2632_v18 = vpop.f32.mrb[1].mxu1 }
 0x1ca   : > { %870 = vmax.xlane.f32.xlu0 %v2632_v18  ;;  %v2635_v19 = vpop.f32.mrb[2].mxu1 }
 0x1cb   : > { %v2637_v20 = vpop.f32.mrb[3].mxu1 }
 0x1cd   : > { %876 = vmax.xlane.f32.xlu1 %v2635_v19 }
 0x1ce   : > { %872 = vmax.xlane.f32.xlu0 %v2637_v20 }
 0x1d0   : > { %v2641_v21 = vpop.f32.mrb[4].mxu1 }
 0x1d1   : > { %v2643_v22 = vpop.f32.mrb[5].mxu1 }
 0x1d2   : > { %878 = vmax.xlane.f32.xlu0 %v2643_v22  ;;  %v2646_v23 = vpop.f32.mrb[6].mxu1 }
 0x1d3   : > { %v2648_v24 = vpop.f32.mrb[7].mxu1 }
 0x1d4   : > { %880 = vmax.xlane.f32.xlu1 %v2648_v24 }
 0x1d6   : > { %882 = vmax.xlane.f32.xlu0 %v2641_v21 }
 0x1d8   : > { %884 = vmax.xlane.f32.xlu1 %v2646_v23  ;;  %v2653_v25 = vpop.f32.mrb[8].mxu1 }
 0x1d9   : > { %v2655_v26 = vpop.f32.mrb[9].mxu1 }
 0x1da   : > { %886 = vmax.xlane.f32.xlu0 %v2655_v26  ;;  %v2658_v27 = vpop.f32.mrb[10].mxu1 }
 0x1db   : > { %v2660_v28 = vpop.f32.mrb[11].mxu1 }
 0x1dc   : > { %888 = vmax.xlane.f32.xlu1 %v2660_v28 }
 0x1de   : > { %890 = vmax.xlane.f32.xlu0 %v2653_v25 }
 0x1e0   : > { %892 = vmax.xlane.f32.xlu1 %v2658_v27  ;;  %v2665_v29 = vpop.f32.mrb[12].mxu1 }
 0x1e1   : > { %v2668_v31 = vpop.f32.mrb[13].mxu1 }
 0x1e2   : > { %894 = vmax.xlane.f32.xlu0 %v2668_v31  ;;  %v2671_v32 = vpop.f32.mrb[14].mxu1 }
 0x1e3   : > { %v2673_v33 = vpop.f32.mrb[15].mxu1 }
 0x1e4   : > { %896 = vmax.xlane.f32.xlu1 %v2673_v33 }
 0x1e6   : > { %898 = vmax.xlane.f32.xlu0 %v2665_v29 }
 0x1e8   : > { %900 = vmax.xlane.f32.xlu1 %v2671_v32  ;;  %v2678_v34 = vpop.f32.mrb[16].mxu1 }
 0x1e9   : > { %v2681_v36 = vpop.f32.mrb[17].mxu1 }
 0x1ea   : > { %902 = vmax.xlane.f32.xlu0 %v2681_v36  ;;  %v2684_v37 = vpop.f32.mrb[18].mxu1 }
 0x1eb   : > { %v2686_v38 = vpop.f32.mrb[19].mxu1 }
 0x1ec   : > { %904 = vmax.xlane.f32.xlu1 %v2686_v38 }
 0x1ee   : > { %906 = vmax.xlane.f32.xlu0 %v2678_v34 }
 0x1f0   : > { %908 = vmax.xlane.f32.xlu1 %v2684_v37  ;;  %v2691_v39 = vpop.f32.mrb[20].mxu1 }
 0x1f1   : > { %v2693_v40 = vpop.f32.mrb[21].mxu1 }
 0x1f2   : > { %910 = vmax.xlane.f32.xlu0 %v2693_v40  ;;  %v2696_v41 = vpop.f32.mrb[22].mxu1 }
 0x1f3   : > { %v2698_v42 = vpop.f32.mrb[23].mxu1 }
 0x1f4   : > { %912 = vmax.xlane.f32.xlu1 %v2698_v42 }
 0x1f6   : > { %914 = vmax.xlane.f32.xlu0 %v2691_v39 }
 0x1f8   : > { %916 = vmax.xlane.f32.xlu1 %v2696_v41  ;;  %v2703_v43 = vpop.f32.mrb[24].mxu1 }
 0x1f9   : > { %v2705_v44 = vpop.f32.mrb[25].mxu1 }
 0x1fa   : > { %918 = vmax.xlane.f32.xlu0 %v2705_v44  ;;  %v2708_v45 = vpop.f32.mrb[26].mxu1 }
 0x1fb   : > { %v2710_v46 = vpop.f32.mrb[27].mxu1 }
 0x1fc   : > { %920 = vmax.xlane.f32.xlu1 %v2710_v46 }
 0x1fe   : > { %922 = vmax.xlane.f32.xlu0 %v2703_v43 }
 0x200   : > { %924 = vmax.xlane.f32.xlu1 %v2708_v45  ;;  %v2715_v47 = vpop.f32.mrb[28].mxu1 }
 0x201   : > { %v2717_v48 = vpop.f32.mrb[29].mxu1 }
 0x202   : > { %926 = vmax.xlane.f32.xlu0 %v2717_v48  ;;  %v2720_v49 = vpop.f32.mrb[30].mxu1 }
 0x203   : > { %v2722_v50 = vpop.f32.mrb[31].mxu1 }
 0x204   : > { %928 = vmax.xlane.f32.xlu1 %v2722_v50 }
 0x206   : > { %930 = vmax.xlane.f32.xlu0 %v2715_v47 }
 0x208   : > { %932 = vmax.xlane.f32.xlu1 %v2720_v49 }
 0x256   : > { %v875_v51 = vpop.xlane.xlu1 %874 }
 0x257   : > { %v936_v52 = vsub.f32 %v2629_v17, %v875_v51  ;;  %v871_v53 = vpop.xlane.xlu0 %870 }
 0x258   : > { %v934_v54 = vsub.f32 %v2632_v18, %v871_v53 }
 0x259   : > { %v970_v55 = vmul.f32 1.442695, %v936_v52 }
 0x25a   : > { %v966_v56 = vmul.f32 1.442695, %v934_v54  ;;  %v877_v57 = vpop.xlane.xlu1 %876 }
 0x25b   : > { %v937_v58 = vsub.f32 %v2635_v19, %v877_v57  ;;  %v873_v60 = vpop.xlane.xlu0 %872 }
 0x25c   : > { %2234 = vpow2.f32 %v966_v56  ;;  %v935_v61 = vsub.f32 %v2637_v20, %v873_v60 }
 0x25d   : > { %v972_v62 = vmul.f32 1.442695, %v937_v58  ;;  %2236 = vpow2.f32 %v970_v55 }
 0x25e   : > { %v968_v63 = vmul.f32 1.442695, %v935_v61 }
 0x25f   : > { %2238 = vpow2.f32 %v972_v62  ;;  %v879_v0 = vpop.xlane.xlu0 %878 }
 0x260   : > { %2240 = vpow2.f32 %v968_v63  ;;  %v938_v1 = vsub.f32 %v2643_v22, %v879_v0 }
 0x261   : > { %v881_v2 = vpop.xlane.xlu1 %880 }
 0x262   : > { %v974_v3 = vmul.f32 1.442695, %v938_v1  ;;  %v939_v4 = vsub.f32 %v2648_v24, %v881_v2 }
 0x263   : > { %v883_v5 = vpop.xlane.xlu0 %882 }
 0x264   : > { %v976_v6 = vmul.f32 1.442695, %v939_v4  ;;  %v940_v7 = vsub.f32 %v2641_v21, %v883_v5  ;;  %2242 = vpow2.f32 %v974_v3 }
 0x265   : > { %v885_v8 = vpop.xlane.xlu1 %884 }
 0x266   : > { %v2235_v9 = vpop.eup %2234  ;;  %2244 = vpow2.f32 %v976_v6  ;;  %v978_v10 = vmul.f32 1.442695, %v940_v7  ;;  %v941_v11 = vsub.f32 %v2646_v23, %v885_v8 }
 0x267   : > { %v887_v12 = vpop.xlane.xlu0 %886  ;;  %1030 = vadd.xlane.f32.xlu0 %v2235_v9  ;;  %v2735_v13 = vpop.eup %2236 }
 0x268   : > { %2246 = vpow2.f32 %v978_v10  ;;  %v980_v59 = vmul.f32 1.442695, %v941_v11  ;;  %v942_v14 = vsub.f32 %v2655_v26, %v887_v12 }
 0x269   : > { %v2738_v15 = vpop.eup %2238  ;;  %v889_v16 = vpop.xlane.xlu1 %888 }
 0x26a   : > { %v2241_v17 = vpop.eup %2240  ;;  %2248 = vpow2.f32 %v980_v59  ;;  %v982_v18 = vmul.f32 1.442695, %v942_v14  ;;  %v943_v19 = vsub.f32 %v2660_v28, %v889_v16  ;;  %v1127_v20 = vpack.c.bf16 %v2738_v15, %v2735_v13 }
 0x26b   : > { %v891_v21 = vpop.xlane.xlu0 %890  ;;  %1032 = vadd.xlane.f32.xlu1 %v2241_v17  ;;  %v1126_v22 = vpack.c.bf16 %v2241_v17, %v2235_v9 }
 0x26c   : > { %v984_v23 = vmul.f32 1.442695, %v943_v19  ;;  %v944_v24 = vsub.f32 %v2653_v25, %v891_v21  ;;  %2250 = vpow2.f32 %v982_v18 }
 0x26d   : > { %2073 = vmatprep.mubr.bf16.mxu0 %v1126_v22  ;;  %v893_v26 = vpop.xlane.xlu1 %892 }
 0x26e   : > { %2252 = vpow2.f32 %v984_v23  ;;  %v986_v30 = vmul.f32 1.442695, %v944_v24  ;;  %v945_v35 = vsub.f32 %v2658_v27, %v893_v26  ;;  %2074 = vmatmul.mubr.bf16.vlgmr.msra.gmra.mrb[32].mxu0 %v1127_v20  ;;  %v2243_v51 = vpop.eup %2242 }
 0x26f   : > { %v895_v52 = vpop.xlane.xlu0 %894 }
 0x270   : > { %v2245_v28 = vpop.eup %2244  ;;  %2254 = vpow2.f32 %v986_v30  ;;  %v988_v53 = vmul.f32 1.442695, %v945_v35  ;;  %v946_v54 = vsub.f32 %v2668_v31, %v895_v52 }
 0x271   : > { %v897_v55 = vpop.xlane.xlu1 %896  ;;  %v1128_v56 = vpack.c.bf16 %v2245_v28, %v2243_v51 }
 0x272   : > { %v2247_v57 = vpop.eup %2246  ;;  %2256 = vpow2.f32 %v988_v53  ;;  %v990_v25 = vmul.f32 1.442695, %v946_v54  ;;  %v947_v58 = vsub.f32 %v2673_v33, %v897_v55 }
 0x273   : > { %2077 = vmatprep.mubr.bf16.mxu0 %v1128_v56  ;;  %v899_v60 = vpop.xlane.xlu0 %898  ;;  %1042 = vadd.xlane.f32.xlu0 %v2247_v57 }
 0x274   : > { %v2249_v61 = vpop.eup %2248  ;;  %v992_v27 = vmul.f32 1.442695, %v947_v58  ;;  %v948_v62 = vsub.f32 %v2665_v29, %v899_v60  ;;  %2258 = vpow2.f32 %v990_v25 }
 0x275   : > { %v901_v63 = vpop.xlane.xlu1 %900  ;;  %1044 = vadd.xlane.f32.xlu1 %v2249_v61  ;;  %v1129_v0 = vpack.c.bf16 %v2249_v61, %v2247_v57 }
 0x276   : > { %2260 = vpow2.f32 %v992_v27  ;;  %v994_v31 = vmul.f32 1.442695, %v948_v62  ;;  %v949_v1 = vsub.f32 %v2671_v32, %v901_v63  ;;  %v2251_v2 = vpop.eup %2250 }
 0x277   : > { %2078 = vmatmul.mubr.bf16.gmra.mrb[36].mxu0 %v1129_v0  ;;  %v903_v3 = vpop.xlane.xlu0 %902  ;;  %1038 = vadd.xlane.f32.xlu0 %v2243_v51 }
 0x278   : > { %v2253_v33 = vpop.eup %2252  ;;  %2262 = vpow2.f32 %v994_v31  ;;  %v996_v4 = vmul.f32 1.442695, %v949_v1  ;;  %v950_v5 = vsub.f32 %v2681_v36, %v903_v3 }
 0x279   : > { %v905_v6 = vpop.xlane.xlu1 %904  ;;  %1040 = vadd.xlane.f32.xlu1 %v2245_v28  ;;  %v1130_v29 = vpack.c.bf16 %v2253_v33, %v2251_v2 }
 0x27a   : > { %v2255_v7 = vpop.eup %2254  ;;  %2264 = vpow2.f32 %v996_v4  ;;  %v998_v8 = vmul.f32 1.442695, %v950_v5  ;;  %v951_v9 = vsub.f32 %v2686_v38, %v905_v6  ;;  %v2226_v5 = vld [vmem:[%s2989_s5] sm:$0xff]  }
 0x27b   : > { %2081 = vmatprep.mubr.bf16.mxu0 %v1130_v29  ;;  %v907_v10 = vpop.xlane.xlu0 %906  ;;  %1050 = vadd.xlane.f32.xlu0 %v2255_v7 }
 0x27c   : > { %v2257_v32 = vpop.eup %2256  ;;  %v1000_v11 = vmul.f32 1.442695, %v951_v9  ;;  %v952_v12 = vsub.f32 %v2678_v34, %v907_v10  ;;  %2266 = vpow2.f32 %v998_v8  ;;  %2153 = vmatprep.subr.bf16.mxu1 %v2226_v5  ;;  %2105 = vmatprep.subr.bf16.mxu0 %v2226_v5 }
 0x27d   : > { %v909_v59 = vpop.xlane.xlu1 %908  ;;  %1052 = vadd.xlane.f32.xlu1 %v2257_v32  ;;  %v1131_v14 = vpack.c.bf16 %v2257_v32, %v2255_v7  ;;  %2161 = vmatpush3.bf16.msra.mxu1 %v2226_v5 }
 0x27e   : > { %2268 = vpow2.f32 %v1000_v11  ;;  %v1002_v36 = vmul.f32 1.442695, %v952_v12  ;;  %v953_v16 = vsub.f32 %v2684_v37, %v909_v59  ;;  %v2259_v17 = vpop.eup %2258  ;;  %2106 = vmatpush3.bf16.msra.mxu0 %v2226_v5 }
 0x27f   : > { %2082 = vmatmul.mubr.bf16.gmra.mrb[40].mxu0 %v1131_v14  ;;  %v911_v18 = vpop.xlane.xlu0 %910  ;;  %1046 = vadd.xlane.f32.xlu0 %v2251_v2 }
 0x280   : > { %v2261_v38 = vpop.eup %2260  ;;  %2270 = vpow2.f32 %v1002_v36  ;;  %v1004_v19 = vmul.f32 1.442695, %v953_v16  ;;  %v954_v20 = vsub.f32 %v2693_v40, %v911_v18  ;;  %v2227_v36 = vld [vmem:[%s2989_s5 + $0x8] sm:$0xff]  }
 0x281   : > { %v913_v21 = vpop.xlane.xlu1 %912  ;;  %1048 = vadd.xlane.f32.xlu1 %v2253_v33  ;;  %v1132_v34 = vpack.c.bf16 %v2261_v38, %v2259_v17  ;;  %2154 = vmatprep.subr.bf16.mxu1 %v2227_v36 }
 0x282   : > { %v2263_v22 = vpop.eup %2262  ;;  %2272 = vpow2.f32 %v1004_v19  ;;  %v1006_v23 = vmul.f32 1.442695, %v954_v20  ;;  %v955_v24 = vsub.f32 %v2698_v42, %v913_v21  ;;  %2107 = vmatprep.subr.bf16.mxu0 %v2227_v36  ;;  %2162 = vmatpush3.bf16.msra.mxu1 %v2227_v36  ;;  %v2228_v20 = vld [vmem:[%s2989_s5 + $0x10] sm:$0xff]  }
 0x283   : > { %2085 = vmatprep.mubr.bf16.mxu0 %v1132_v34  ;;  %v915_v26 = vpop.xlane.xlu0 %914  ;;  %1058 = vadd.xlane.f32.xlu0 %v2263_v22 }
 0x284   : > { %v2265_v37 = vpop.eup %2264  ;;  %v1008_v30 = vmul.f32 1.442695, %v955_v24  ;;  %v956_v35 = vsub.f32 %v2691_v39, %v915_v26  ;;  %2274 = vpow2.f32 %v1006_v23  ;;  %2108 = vmatpush3.bf16.msra.mxu0 %v2227_v36  ;;  %2155 = vmatprep.subr.bf16.mxu1 %v2228_v20  ;;  %v2229_v23 = vld [vmem:[%s2989_s5 + $0x18] sm:$0xff]   ;;  %v2232_v24 = vld [vmem:[%s2989_s5 + $0x30] sm:$0xff]  }
 0x285   : > { %v917_v51 = vpop.xlane.xlu1 %916  ;;  %1060 = vadd.xlane.f32.xlu1 %v2265_v37  ;;  %v1133_v52 = vpack.c.bf16 %v2265_v37, %v2263_v22  ;;  %2109 = vmatprep.subr.bf16.mxu0 %v2228_v20  ;;  %v2233_v26 = vld [vmem:[%s2989_s5 + $0x38] sm:$0xff]  }
 0x286   : > { %2276 = vpow2.f32 %v1008_v30  ;;  %v1010_v40 = vmul.f32 1.442695, %v956_v35  ;;  %v957_v28 = vsub.f32 %v2696_v41, %v917_v51  ;;  %v2267_v53 = vpop.eup %2266  ;;  %2163 = vmatpush3.bf16.msra.mxu1 %v2228_v20 }
 0x287   : > { %2086 = vmatmul.mubr.bf16.gmra.mrb[44].mxu0 %v1133_v52  ;;  %v919_v54 = vpop.xlane.xlu0 %918  ;;  %1054 = vadd.xlane.f32.xlu0 %v2259_v17 }
 0x288   : > { %v2269_v42 = vpop.eup %2268  ;;  %2278 = vpow2.f32 %v1010_v40  ;;  %v1012_v55 = vmul.f32 1.442695, %v957_v28  ;;  %v958_v56 = vsub.f32 %v2705_v44, %v919_v54  ;;  %2110 = vmatpush3.bf16.msra.mxu0 %v2228_v20  ;;  %2156 = vmatprep.subr.bf16.mxu1 %v2229_v23 }
 0x289   : > { %v921_v57 = vpop.xlane.xlu1 %920  ;;  %1056 = vadd.xlane.f32.xlu1 %v2261_v38  ;;  %v1134_v39 = vpack.c.bf16 %v2269_v42, %v2267_v53  ;;  %2111 = vmatprep.subr.bf16.mxu0 %v2229_v23 }
 0x28a   : > { %v2271_v25 = vpop.eup %2270  ;;  %2280 = vpow2.f32 %v1012_v55  ;;  %v1014_v58 = vmul.f32 1.442695, %v958_v56  ;;  %v959_v60 = vsub.f32 %v2710_v46, %v921_v57  ;;  %2164 = vmatpush3.bf16.msra.mxu1 %v2229_v23 }
 0x28b   : > { %2089 = vmatprep.mubr.bf16.mxu0 %v1134_v39  ;;  %v923_v61 = vpop.xlane.xlu0 %922  ;;  %1066 = vadd.xlane.f32.xlu0 %v2271_v25 }
 0x28c   : > { %v2273_v41 = vpop.eup %2272  ;;  %v1016_v27 = vmul.f32 1.442695, %v959_v60  ;;  %v960_v62 = vsub.f32 %v2703_v43, %v923_v61  ;;  %2282 = vpow2.f32 %v1014_v58  ;;  %2112 = vmatpush3.bf16.msra.mxu0 %v2229_v23 }
 0x28d   : > { %v925_v63 = vpop.xlane.xlu1 %924  ;;  %1068 = vadd.xlane.f32.xlu1 %v2273_v41  ;;  %v1135_v0 = vpack.c.bf16 %v2273_v41, %v2271_v25 }
 0x28e   : > { %2284 = vpow2.f32 %v1016_v27  ;;  %v1018_v44 = vmul.f32 1.442695, %v960_v62  ;;  %v961_v31 = vsub.f32 %v2708_v45, %v925_v63  ;;  %v2275_v1 = vpop.eup %2274 }
 0x28f   : > { %2090 = vmatmul.mubr.bf16.gmra.mrb[48].mxu0 %v1135_v0  ;;  %1062 = vadd.xlane.f32.xlu0 %v2267_v53  ;;  %v927_v2 = vpop.xlane.xlu0 %926 }
 0x290   : > { %v2277_v46 = vpop.eup %2276  ;;  %2286 = vpow2.f32 %v1018_v44  ;;  %v1020_v3 = vmul.f32 1.442695, %v961_v31  ;;  %v962_v33 = vsub.f32 %v2717_v48, %v927_v2 }
 0x291   : > { %1064 = vadd.xlane.f32.xlu1 %v2269_v42  ;;  %v929_v4 = vpop.xlane.xlu1 %928  ;;  %v1136_v43 = vpack.c.bf16 %v2277_v46, %v2275_v1 }
 0x292   : > { %v2279_v6 = vpop.eup %2278  ;;  %2288 = vpow2.f32 %v1020_v3  ;;  %v1022_v29 = vmul.f32 1.442695, %v962_v33  ;;  %v963_v45 = vsub.f32 %v2722_v50, %v929_v4 }
 0x293   : > { %2093 = vmatprep.mubr.bf16.mxu0 %v1136_v43  ;;  %1074 = vadd.xlane.f32.xlu0 %v2279_v6  ;;  %v931_v7 = vpop.xlane.xlu0 %930 }
 0x294   : > { %v2281_v8 = vpop.eup %2280  ;;  %v1024_v9 = vmul.f32 1.442695, %v963_v45  ;;  %v964_v10 = vsub.f32 %v2715_v47, %v931_v7  ;;  %2290 = vpow2.f32 %v1022_v29 }
 0x295   : > { %1076 = vadd.xlane.f32.xlu1 %v2281_v8  ;;  %v933_v48 = vpop.xlane.xlu1 %932  ;;  %v1137_v32 = vpack.c.bf16 %v2281_v8, %v2279_v6 }
 0x296   : > { %2292 = vpow2.f32 %v1024_v9  ;;  %v1026_v11 = vmul.f32 1.442695, %v964_v10  ;;  %v965_v12 = vsub.f32 %v2720_v49, %v933_v48  ;;  %v2283_v50 = vpop.eup %2282 }
 0x297   : > { %2094 = vmatmul.mubr.bf16.gmra.mrb[52].mxu0 %v1137_v32  ;;  %1070 = vadd.xlane.f32.xlu0 %v2275_v1 }
 0x298   : > { %v2285_v59 = vpop.eup %2284  ;;  %v1028_v14 = vmul.f32 1.442695, %v965_v12  ;;  %2294 = vpow2.f32 %v1026_v11 }
 0x299   : > { %1072 = vadd.xlane.f32.xlu1 %v2277_v46  ;;  %v1138_v47 = vpack.c.bf16 %v2285_v59, %v2283_v50 }
 0x29a   : > { %v2287_v16 = vpop.eup %2286  ;;  %2296 = vpow2.f32 %v1028_v14 }
 0x29b   : > { %2097 = vmatprep.mubr.bf16.mxu0 %v1138_v47  ;;  %1082 = vadd.xlane.f32.xlu0 %v2287_v16 }
 0x29c   : > { %v2289_v17 = vpop.eup %2288 }
 0x29d   : > { %1084 = vadd.xlane.f32.xlu1 %v2289_v17  ;;  %v1139_v49 = vpack.c.bf16 %v2289_v17, %v2287_v16 }
 0x29e   : > { %v2291_v18 = vpop.eup %2290 }
 0x29f   : > { %2098 = vmatmul.mubr.bf16.gmra.mrb[56].mxu0 %v1139_v49  ;;  %1078 = vadd.xlane.f32.xlu0 %v2283_v50 }
 0x2a0   : > { %v2293_v38 = vpop.eup %2292 }
 0x2a1   : > { %1080 = vadd.xlane.f32.xlu1 %v2285_v59  ;;  %v1140_v19 = vpack.c.bf16 %v2293_v38, %v2291_v18 }
 0x2a2   : > { %v2295_v21 = vpop.eup %2294 }
 0x2a3   : > { %1034 = vadd.xlane.f32.xlu0 %v2735_v13  ;;  %2101 = vmatprep.mubr.bf16.mxu0 %v1140_v19  ;;  %v2230_v13 = vld [vmem:[%s2989_s5 + $0x20] sm:$0xff]  }
 0x2a4   : > { %v2297_v34 = vpop.eup %2296  ;;  %2157 = vmatprep.subr.bf16.mxu1 %v2230_v13  ;;  %2113 = vmatprep.subr.bf16.mxu0 %v2230_v13 }
 0x2a5   : > { %1036 = vadd.xlane.f32.xlu1 %v2738_v15  ;;  %v1141_v22 = vpack.c.bf16 %v2297_v34, %v2295_v21  ;;  %2165 = vmatpush3.bf16.msra.mxu1 %v2230_v13  ;;  %v2231_v15 = vld [vmem:[%s2989_s5 + $0x28] sm:$0xff]  }
 0x2a6   : > { %2114 = vmatpush3.bf16.msra.mxu0 %v2230_v13  ;;  %2158 = vmatprep.subr.bf16.mxu1 %v2231_v15 }
 0x2a7   : > { %1086 = vadd.xlane.f32.xlu0 %v2291_v18  ;;  %2102 = vmatmul.mubr.bf16.gmra.mrb[60].mxu0 %v1141_v22 }
 0x2a8   : > { %2115 = vmatprep.subr.bf16.mxu0 %v2231_v15 }
 0x2a9   : > { %1088 = vadd.xlane.f32.xlu1 %v2293_v38  ;;  %2166 = vmatpush3.bf16.msra.mxu1 %v2231_v15 }
 0x2aa   : > { %2116 = vmatpush3.bf16.msra.mxu0 %v2231_v15  ;;  %2159 = vmatprep.subr.bf16.mxu1 %v2232_v24 }
 0x2ab   : > { %1090 = vadd.xlane.f32.xlu0 %v2295_v21  ;;  %2117 = vmatprep.subr.bf16.mxu0 %v2232_v24 }
 0x2ad   : > { %1092 = vadd.xlane.f32.xlu1 %v2297_v34  ;;  %2167 = vmatpush3.bf16.msra.mxu1 %v2232_v24 }
 0x2ae   : > { %2118 = vmatpush3.bf16.msra.mxu0 %v2232_v24  ;;  %2160 = vmatprep.subr.bf16.mxu1 %v2233_v26 }
 0x2af   : > { %2119 = vmatprep.subr.bf16.mxu0 %v2233_v26 }
 0x2b1   : > { %2168 = vmatpush3.bf16.msra.mxu1 %v2233_v26 }
 0x2b2   : > { %2120 = vmatpush3.bf16.msra.mxu0 %v2233_v26 }
 0x2f4   : > { %v1031_v37 = vpop.xlane.xlu0 %1030 }
 0x2f5   : > { %2298 = vrcp.f32 %v1031_v37 }
 0x2f8   : > { %v1033_v30 = vpop.xlane.xlu1 %1032 }
 0x2ff   : > { %v2299_v3 = vpop.eup %2298 }
 0x300   : > { %v1043_v35 = vpop.xlane.xlu0 %1042 }
 0x302   : > { %v1045_v51 = vpop.xlane.xlu1 %1044 }
 0x304   : > { %v1039_v52 = vpop.xlane.xlu0 %1038 }
 0x306   : > { %v1041_v40 = vpop.xlane.xlu1 %1040 }
 0x308   : > { %v1051_v28 = vpop.xlane.xlu0 %1050 }
 0x30a   : > { %v1053_v53 = vpop.xlane.xlu1 %1052 }
 0x30c   : > { %v1047_v54 = vpop.xlane.xlu0 %1046 }
 0x30e   : > { %v1049_v42 = vpop.xlane.xlu1 %1048 }
 0x310   : > { %v1059_v55 = vpop.xlane.xlu0 %1058 }
 0x312   : > { %v1061_v56 = vpop.xlane.xlu1 %1060 }
 0x314   : > { %v1055_v57 = vpop.xlane.xlu0 %1054 }
 0x316   : > { %v2791_v39 = vpop.xlane.xlu1 %1056 }
 0x318   : > { %v2793_v25 = vpop.xlane.xlu0 %1066 }
 0x31a   : > { %v2795_v58 = vpop.xlane.xlu1 %1068 }
 0x31c   : > { %v2797_v60 = vpop.xlane.xlu0 %1062 }
 0x31e   : > { %v2799_v61 = vpop.xlane.xlu1 %1064 }
 0x320   : > { %v2801_v41 = vpop.xlane.xlu0 %1074 }
 0x322   : > { %v2803_v27 = vpop.xlane.xlu1 %1076 }
 0x324   : > { %v2805_v62 = vpop.xlane.xlu0 %1070 }
 0x326   : > { %v2807_v63 = vpop.xlane.xlu1 %1072 }
 0x328   : > { %v2809_v0 = vpop.xlane.xlu0 %1082 }
 0x32a   : > { %v2811_v44 = vpop.xlane.xlu1 %1084 }
 0x32c   : > { %v2813_v31 = vpop.xlane.xlu0 %1078 }
 0x32e   : > { %v2815_v1 = vpop.xlane.xlu1 %1080 }
 0x330   : > { %v1035_v2 = vpop.xlane.xlu0 %1034 }
 0x331   : > { %2300 = vrcp.f32 %v1035_v2 }
 0x332   : > { %v1037_v46 = vpop.xlane.xlu1 %1036 }
 0x333   : > { %2302 = vrcp.f32 %v1037_v46 }
 0x334   : > { %2304 = vrcp.f32 %v1033_v30 }
 0x335   : > { %2306 = vrcp.f32 %v1043_v35 }
 0x336   : > { %2308 = vrcp.f32 %v1045_v51 }
 0x337   : > { %2310 = vrcp.f32 %v1039_v52 }
 0x338   : > { %2312 = vrcp.f32 %v1041_v40 }
 0x339   : > { %2314 = vrcp.f32 %v1051_v28 }
 0x33a   : > { %2316 = vrcp.f32 %v1053_v53 }
 0x33b   : > { %v2301_v4 = vpop.eup %2300  ;;  %2318 = vrcp.f32 %v1047_v54 }
 0x33c   : > { %2320 = vrcp.f32 %v1049_v42 }
 0x33d   : > { %v2303_v5 = vpop.eup %2302  ;;  %2322 = vrcp.f32 %v1059_v55 }
 0x33e   : > { %v2305_v29 = vpop.eup %2304  ;;  %2324 = vrcp.f32 %v1061_v56 }
 0x33f   : > { %v2307_v11 = vpop.eup %2306  ;;  %2326 = vrcp.f32 %v1055_v57 }
 0x340   : > { %v2309_v50 = vpop.eup %2308  ;;  %2328 = vrcp.f32 %v2791_v39 }
 0x341   : > { %v2075_v33 = vpop.f32.mrb[32].mxu0  ;;  %v2311_v14 = vpop.eup %2310  ;;  %2330 = vrcp.f32 %v2793_v25 }
 0x342   : > { %v1240_v43 = vpop.f32.mrb[33].mxu0  ;;  %v1369_v45 = vmul.f32 %v2301_v4, %v2075_v33  ;;  %v2313_v36 = vpop.eup %2312  ;;  %2332 = vrcp.f32 %v2795_v58 }
 0x343   : > { %v2076_v6 = vpop.f32.mrb[34].mxu0  ;;  %v1367_v9 = vmul.f32 %v2299_v3, %v1240_v43  ;;  %v2315_v21 = vpop.eup %2314  ;;  %2334 = vrcp.f32 %v2797_v60 }
 0x344   : > { %v1370_v7 = vmul.f32 %v2303_v5, %v2076_v6  ;;  %v1243_v8 = vpop.f32.mrb[35].mxu0  ;;  %v2317_v22 = vpop.eup %2316  ;;  %2336 = vrcp.f32 %v2799_v61 }
 0x345   : > { %v1368_v10 = vmul.f32 %v2305_v29, %v1243_v8  ;;  %v2319_v13 = vpop.eup %2318  ;;  %2338 = vrcp.f32 %v2801_v41 }
 0x346   : > { %v1400_v48 = vpack.c.bf16 %v1370_v7, %v1369_v45  ;;  %v2321_v24 = vpop.eup %2320  ;;  %2340 = vrcp.f32 %v2803_v27  ;;  %v1087_v27 = vpop.xlane.xlu0 %1086 }
 0x347   : > { %v1399_v32 = vpack.c.bf16 %v1368_v10, %v1367_v9  ;;  %v2323_v28 = vpop.eup %2322  ;;  %2342 = vrcp.f32 %v2805_v62 }
 0x348   : > { %v2325_v54 = vpop.eup %2324  ;;  %2344 = vrcp.f32 %v2807_v63 }
 0x349   : > { %2121 = vmatprep.mubr.bf16.mxu0 %v1399_v32  ;;  %v2327_v55 = vpop.eup %2326  ;;  %2346 = vrcp.f32 %v2809_v0 }
 0x34a   : > { %v2079_v12 = vpop.f32.mrb[36].mxu0  ;;  %2122 = vmatmul.mubr.bf16.vlgmr.msra.gmra.mrb[64].mxu0 %v1400_v48  ;;  %v2329_v57 = vpop.eup %2328  ;;  %2348 = vrcp.f32 %v2811_v44 }
 0x34b   : > { %v1256_v59 = vpop.f32.mrb[37].mxu0  ;;  %v1373_v16 = vmul.f32 %v2307_v11, %v2079_v12  ;;  %v2331_v60 = vpop.eup %2330  ;;  %2350 = vrcp.f32 %v2813_v31 }
 0x34c   : > { %v2080_v47 = vpop.f32.mrb[38].mxu0  ;;  %v1371_v18 = vmul.f32 %v2311_v14, %v1256_v59  ;;  %v2333_v4 = vpop.eup %2332  ;;  %2352 = vrcp.f32 %v2815_v1 }
 0x34d   : > { %v1374_v17 = vmul.f32 %v2309_v50, %v2080_v47  ;;  %v1259_v49 = vpop.f32.mrb[39].mxu0  ;;  %v2335_v5 = vpop.eup %2334  ;;  %2354 = vrcp.f32 %v1087_v27 }
 0x34e   : > { %v1372_v38 = vmul.f32 %v2313_v36, %v1259_v49  ;;  %v2337_v29 = vpop.eup %2336  ;;  %v1089_v48 = vpop.xlane.xlu1 %1088 }
 0x34f   : > { %v1402_v19 = vpack.c.bf16 %v1374_v17, %v1373_v16  ;;  %v2339_v32 = vpop.eup %2338  ;;  %v1091_v16 = vpop.xlane.xlu0 %1090 }
 0x350   : > { %v1401_v20 = vpack.c.bf16 %v1372_v38, %v1371_v18  ;;  %v2341_v11 = vpop.eup %2340  ;;  %2356 = vrcp.f32 %v1091_v16 }
 0x351   : > { %v2343_v50 = vpop.eup %2342 }
 0x352   : > { %v2083_v34 = vpop.f32.mrb[40].mxu0  ;;  %2125 = vmatprep.mubr.bf16.mxu1 %v1401_v20  ;;  %v2345_v14 = vpop.eup %2344 }
 0x353   : > { %v1272_v23 = vpop.f32.mrb[41].mxu0  ;;  %2126 = vmatmul.mubr.bf16.vlgmr.msra.gmra.mrb[32].mxu1 %v1402_v19  ;;  %v1377_v26 = vmul.f32 %v2315_v21, %v2083_v34  ;;  %v1093_v49 = vpop.xlane.xlu1 %1092 }
 0x354   : > { %v2084_v15 = vpop.f32.mrb[42].mxu0  ;;  %v1375_v35 = vmul.f32 %v2319_v13, %v1272_v23  ;;  %v2347_v38 = vpop.eup %2346  ;;  %2358 = vrcp.f32 %v1093_v49 }
 0x355   : > { %v1378_v37 = vmul.f32 %v2317_v22, %v2084_v15  ;;  %v1275_v30 = vpop.f32.mrb[43].mxu0  ;;  %v2349_v1 = vpop.eup %2348  ;;  %2360 = vrcp.f32 %v1089_v48 }
 0x356   : > { %v1376_v51 = vmul.f32 %v2321_v24, %v1275_v30  ;;  %v2351_v21 = vpop.eup %2350 }
 0x357   : > { %v1404_v52 = vpack.c.bf16 %v1378_v37, %v1377_v26  ;;  %v2353_v22 = vpop.eup %2352 }
 0x358   : > { %v1403_v40 = vpack.c.bf16 %v1376_v51, %v1375_v35  ;;  %v2355_v35 = vpop.eup %2354 }
 0x35a   : > { %v2087_v53 = vpop.f32.mrb[44].mxu0  ;;  %2129 = vmatprep.mubr.bf16.mxu1 %v1403_v40 }
 0x35b   : > { %v1288_v42 = vpop.f32.mrb[45].mxu0  ;;  %2130 = vmatmul.mubr.bf16.gmra.mrb[36].mxu1 %v1404_v52  ;;  %v1381_v39 = vmul.f32 %v2323_v28, %v2087_v53  ;;  %v2357_v52 = vpop.eup %2356 }
 0x35c   : > { %v2088_v56 = vpop.f32.mrb[46].mxu0  ;;  %v1379_v25 = vmul.f32 %v2327_v55, %v1288_v42 }
 0x35d   : > { %v1382_v2 = vmul.f32 %v2325_v54, %v2088_v56  ;;  %v1291_v46 = vpop.f32.mrb[47].mxu0 }
 0x35e   : > { %v1380_v3 = vmul.f32 %v2329_v57, %v1291_v46  ;;  %v2359_v28 = vpop.eup %2358 }
 0x35f   : > { %v1406_v33 = vpack.c.bf16 %v1382_v2, %v1381_v39  ;;  %v2361_v54 = vpop.eup %2360 }
 0x360   : > { %v1405_v58 = vpack.c.bf16 %v1380_v3, %v1379_v25  ;;  %v2833_v25 = vld [vmem:[%s2990_s6] ss:$0 sm:$0xff] }
 0x362   : > { %v2091_v61 = vpop.f32.mrb[48].mxu0  ;;  %2133 = vmatprep.mubr.bf16.mxu1 %v1405_v58 }
 0x363   : > { %v1304_v43 = vpop.f32.mrb[49].mxu0  ;;  %2134 = vmatmul.mubr.bf16.gmra.mrb[40].mxu1 %v1406_v33  ;;  %v1385_v45 = vmul.f32 %v2331_v60, %v2091_v61 }
 0x364   : > { %v2092_v6 = vpop.f32.mrb[50].mxu0  ;;  %v1383_v41 = vmul.f32 %v2335_v5, %v1304_v43 }
 0x365   : > { %v1386_v7 = vmul.f32 %v2333_v4, %v2092_v6  ;;  %v1307_v8 = vpop.f32.mrb[51].mxu0  ;;  %v2362_v4 = vld [vmem:[%s2523_s19 + $0x10] sm:$0xff] }
 0x366   : > { %v1384_v9 = vmul.f32 %v2337_v29, %v1307_v8  ;;  %v2363_v29 = vld [vmem:[%s2523_s19] sm:$0xff]  ;;  %v2364_v8 = vld [vmem:[%s2523_s19 + $0x18] sm:$0xff] }
 0x367   : > { %v1408_v10 = vpack.c.bf16 %v1386_v7, %v1385_v45 }
 0x368   : > { %v1407_v62 = vpack.c.bf16 %v1384_v9, %v1383_v41  ;;  %v2365_v9 = vld [vmem:[%s2523_s19 + $0x8] sm:$0xff] }
 0x36a   : > { %v2095_v63 = vpop.f32.mrb[52].mxu0  ;;  %2137 = vmatprep.mubr.bf16.mxu1 %v1407_v62 }
 0x36b   : > { %v1320_v12 = vpop.f32.mrb[53].mxu0  ;;  %2138 = vmatmul.mubr.bf16.gmra.mrb[44].mxu1 %v1408_v10  ;;  %v1389_v47 = vmul.f32 %v2339_v32, %v2095_v63 }
 0x36c   : > { %v2096_v59 = vpop.f32.mrb[54].mxu0  ;;  %v1387_v17 = vmul.f32 %v2343_v50, %v1320_v12 }
 0x36d   : > { %v1390_v0 = vmul.f32 %v2341_v11, %v2096_v59  ;;  %v1323_v36 = vpop.f32.mrb[55].mxu0  ;;  %v2366_v11 = vld [vmem:[%s2523_s19 + $0x30] sm:$0xff] }
 0x36e   : > { %v1388_v44 = vmul.f32 %v2345_v14, %v1323_v36  ;;  %v2367_v14 = vld [vmem:[%s2523_s19 + $0x20] sm:$0xff]  ;;  %v2368_v36 = vld [vmem:[%s2523_s19 + $0x38] sm:$0xff] }
 0x36f   : > { %v1410_v18 = vpack.c.bf16 %v1390_v0, %v1389_v47 }
 0x370   : > { %v1409_v31 = vpack.c.bf16 %v1388_v44, %v1387_v17  ;;  %v2369_v17 = vld [vmem:[%s2523_s19 + $0x28] sm:$0xff] }
 0x372   : > { %v2099_v19 = vpop.f32.mrb[56].mxu0  ;;  %2141 = vmatprep.mubr.bf16.mxu1 %v1409_v31 }
 0x373   : > { %v1336_v20 = vpop.f32.mrb[57].mxu0  ;;  %2142 = vmatmul.mubr.bf16.gmra.mrb[48].mxu1 %v1410_v18  ;;  %v1393_v23 = vmul.f32 %v2347_v38, %v2099_v19 }
 0x374   : > { %v2100_v34 = vpop.f32.mrb[58].mxu0  ;;  %v1391_v24 = vmul.f32 %v2351_v21, %v1336_v20 }
 0x375   : > { %v1394_v13 = vmul.f32 %v2349_v1, %v2100_v34  ;;  %v1339_v15 = vpop.f32.mrb[59].mxu0  ;;  %v2370_v1 = vld [vmem:[%s2523_s19 + $0x50] sm:$0xff] }
 0x376   : > { %v1392_v26 = vmul.f32 %v2353_v22, %v1339_v15  ;;  %v2371_v22 = vld [vmem:[%s2523_s19 + $0x40] sm:$0xff]  ;;  %v2372_v15 = vld [vmem:[%s2523_s19 + $0x58] sm:$0xff] }
 0x377   : > { %v1412_v37 = vpack.c.bf16 %v1394_v13, %v1393_v23 }
 0x378   : > { %v1411_v30 = vpack.c.bf16 %v1392_v26, %v1391_v24  ;;  %v2373_v26 = vld [vmem:[%s2523_s19 + $0x48] sm:$0xff] }
 0x37a   : > { %v2103_v51 = vpop.f32.mrb[60].mxu0  ;;  %2145 = vmatprep.mubr.bf16.mxu1 %v1411_v30 }
 0x37b   : > { %v1352_v40 = vpop.f32.mrb[61].mxu0  ;;  %2146 = vmatmul.mubr.bf16.gmra.mrb[52].mxu1 %v1412_v37  ;;  %v1397_v42 = vmul.f32 %v2357_v52, %v2103_v51 }
 0x37c   : > { %v2104_v53 = vpop.f32.mrb[62].mxu0  ;;  %v1395_v57 = vmul.f32 %v2355_v35, %v1352_v40 }
 0x37d   : > { %v1398_v55 = vmul.f32 %v2359_v28, %v2104_v53  ;;  %v1355_v56 = vpop.f32.mrb[63].mxu0  ;;  %v2374_v28 = vld [vmem:[%s2523_s19 + $0x70] sm:$0xff] }
 0x37e   : > { %v1396_v39 = vmul.f32 %v2361_v54, %v1355_v56 }
 0x37f   : > { %v1414_v2 = vpack.c.bf16 %v1398_v55, %v1397_v42  ;;  %v2375_v55 = vld [vmem:[%s2523_s19 + $0x60] sm:$0xff] }
 0x380   : > { %v1413_v46 = vpack.c.bf16 %v1396_v39, %v1395_v57  ;;  %v2376_v39 = vld [vmem:[%s2523_s19 + $0x78] sm:$0xff] }
 0x382   : > { %2149 = vmatprep.mubr.bf16.mxu1 %v1413_v46  ;;  %v2377_v46 = vld [vmem:[%s2523_s19 + $0x68] sm:$0xff] }
 0x383   : > { %2150 = vmatmul.mubr.bf16.gmra.mrb[56].mxu1 %v1414_v2 }
 0x41d   : > { %v2123_v3 = vpop.f32.mrb[64].mxu0 }
 0x41e   : > { %v1529_v33 = vadd.f32 %v2123_v3, %v2833_v25  ;;  %v1520_v58 = vpop.f32.mrb[65].mxu0 }
 0x41f   : > { %v1521_v60 = vadd.f32 %v2833_v25, %v1520_v58  ;;  %v2124_v61 = vpop.f32.mrb[66].mxu0 }
 0x420   : > { %v1649_v43 = vadd.f32 %v2362_v4, %v1529_v33  ;;  %v1532_v5 = vadd.f32 %v2124_v61, %v2833_v25  ;;  %v1523_v6 = vpop.f32.mrb[67].mxu0 }
 0x421   : > { %v1647_v45 = vadd.f32 %v2363_v29, %v1521_v60  ;;  %v1524_v7 = vadd.f32 %v2833_v25, %v1523_v6 }
 0x422   : > { %1681 = vst.msk [vmem:[%s2840_s11 + $0x10] sm:$0xff] %vm415_vm1, %v1649_v43  ;;  %v1650_v41 = vadd.f32 %v2364_v8, %v1532_v5  ;;  %v2378_v43 = vld [vmem:[%s2523_s19 + $0x90] sm:$0xff] }
 0x423   : > { %1679 = vst.msk [vmem:[%s2840_s11] sm:$0xff] %vm415_vm1, %v1647_v45  ;;  %v1648_v10 = vadd.f32 %v2365_v9, %v1524_v7  ;;  %v2379_v45 = vld [vmem:[%s2523_s19 + $0x80] sm:$0xff] }
 0x424   : > { %1682 = vst.msk [vmem:[%s2840_s11 + $0x18] sm:$0xff] %vm415_vm1, %v1650_v41  ;;  %v2380_v41 = vld [vmem:[%s2523_s19 + $0x98] sm:$0xff] }
 0x425   : > { %1680 = vst.msk [vmem:[%s2840_s11 + $0x8] sm:$0xff] %vm415_vm1, %v1648_v10  ;;  %v2381_v10 = vld [vmem:[%s2523_s19 + $0x88] sm:$0xff] }
 0x426   : > { %v2127_v27 = vpop.f32.mrb[32].mxu1 }
 0x427   : > { %v1545_v62 = vadd.f32 %v2127_v27, %v2833_v25  ;;  %v1536_v48 = vpop.f32.mrb[33].mxu1 }
 0x428   : > { %v1537_v32 = vadd.f32 %v2833_v25, %v1536_v48  ;;  %v2128_v63 = vpop.f32.mrb[34].mxu1 }
 0x429   : > { %v1653_v12 = vadd.f32 %v2366_v11, %v1545_v62  ;;  %v1548_v50 = vadd.f32 %v2128_v63, %v2833_v25  ;;  %v1539_v59 = vpop.f32.mrb[35].mxu1 }
 0x42a   : > { %v1651_v47 = vadd.f32 %v2367_v14, %v1537_v32  ;;  %v1540_v0 = vadd.f32 %v2833_v25, %v1539_v59 }
 0x42b   : > { %1685 = vst.msk [vmem:[%s2840_s11 + $0x30] sm:$0xff] %vm415_vm1, %v1653_v12  ;;  %v1654_v16 = vadd.f32 %v2368_v36, %v1548_v50  ;;  %v2382_v12 = vld [vmem:[%s2523_s19 + $0xb0] sm:$0xff] }
 0x42c   : > { %1683 = vst.msk [vmem:[%s2840_s11 + $0x20] sm:$0xff] %vm415_vm1, %v1651_v47  ;;  %v1652_v44 = vadd.f32 %v2369_v17, %v1540_v0  ;;  %v2383_v47 = vld [vmem:[%s2523_s19 + $0xa0] sm:$0xff] }
 0x42d   : > { %1686 = vst.msk [vmem:[%s2840_s11 + $0x38] sm:$0xff] %vm415_vm1, %v1654_v16  ;;  %v2384_v16 = vld [vmem:[%s2523_s19 + $0xb8] sm:$0xff] }
 0x42e   : > { %1684 = vst.msk [vmem:[%s2840_s11 + $0x28] sm:$0xff] %vm415_vm1, %v1652_v44  ;;  %v2131_v49 = vpop.f32.mrb[36].mxu1  ;;  %v2385_v44 = vld [vmem:[%s2523_s19 + $0xa8] sm:$0xff] }
 0x42f   : > { %v1561_v18 = vadd.f32 %v2131_v49, %v2833_v25  ;;  %v1552_v31 = vpop.f32.mrb[37].mxu1 }
 0x430   : > { %v1553_v38 = vadd.f32 %v2833_v25, %v1552_v31  ;;  %v2132_v19 = vpop.f32.mrb[38].mxu1 }
 0x431   : > { %v1657_v20 = vadd.f32 %v2370_v1, %v1561_v18  ;;  %v1564_v21 = vadd.f32 %v2132_v19, %v2833_v25  ;;  %v1555_v34 = vpop.f32.mrb[39].mxu1 }
 0x432   : > { %v1655_v23 = vadd.f32 %v2371_v22, %v1553_v38  ;;  %v1556_v13 = vadd.f32 %v2833_v25, %v1555_v34 }
 0x433   : > { %1689 = vst.msk [vmem:[%s2840_s11 + $0x50] sm:$0xff] %vm415_vm1, %v1657_v20  ;;  %v1658_v24 = vadd.f32 %v2372_v15, %v1564_v21  ;;  %v2386_v20 = vld [vmem:[%s2523_s19 + $0xd0] sm:$0xff] }
 0x434   : > { %1687 = vst.msk [vmem:[%s2840_s11 + $0x40] sm:$0xff] %vm415_vm1, %v1655_v23  ;;  %v1656_v37 = vadd.f32 %v2373_v26, %v1556_v13  ;;  %v2387_v23 = vld [vmem:[%s2523_s19 + $0xc0] sm:$0xff] }
 0x435   : > { %1690 = vst.msk [vmem:[%s2840_s11 + $0x58] sm:$0xff] %vm415_vm1, %v1658_v24  ;;  %v2388_v24 = vld [vmem:[%s2523_s19 + $0xd8] sm:$0xff] }
 0x436   : > { %1688 = vst.msk [vmem:[%s2840_s11 + $0x48] sm:$0xff] %vm415_vm1, %v1656_v37  ;;  %v2135_v30 = vpop.f32.mrb[40].mxu1  ;;  %v2389_v37 = vld [vmem:[%s2523_s19 + $0xc8] sm:$0xff] }
 0x437   : > { %v1577_v35 = vadd.f32 %v2135_v30, %v2833_v25  ;;  %v1568_v51 = vpop.f32.mrb[41].mxu1 }
 0x438   : > { %v1569_v52 = vadd.f32 %v2833_v25, %v1568_v51  ;;  %v2136_v40 = vpop.f32.mrb[42].mxu1 }
 0x439   : > { %v1661_v53 = vadd.f32 %v2374_v28, %v1577_v35  ;;  %v1580_v54 = vadd.f32 %v2136_v40, %v2833_v25  ;;  %v1571_v42 = vpop.f32.mrb[43].mxu1 }
 0x43a   : > { %v1659_v56 = vadd.f32 %v2375_v55, %v1569_v52  ;;  %v1572_v57 = vadd.f32 %v2833_v25, %v1571_v42 }
 0x43b   : > { %1693 = vst.msk [vmem:[%s2840_s11 + $0x70] sm:$0xff] %vm415_vm1, %v1661_v53  ;;  %v1662_v2 = vadd.f32 %v2376_v39, %v1580_v54  ;;  %v2390_v53 = vld [vmem:[%s2523_s19 + $0xf0] sm:$0xff] }
 0x43c   : > { %1691 = vst.msk [vmem:[%s2840_s11 + $0x60] sm:$0xff] %vm415_vm1, %v1659_v56  ;;  %v1660_v3 = vadd.f32 %v2377_v46, %v1572_v57  ;;  %v2391_v56 = vld [vmem:[%s2523_s19 + $0xe0] sm:$0xff] }
 0x43d   : > { %1694 = vst.msk [vmem:[%s2840_s11 + $0x78] sm:$0xff] %vm415_vm1, %v1662_v2  ;;  %v2392_v2 = vld [vmem:[%s2523_s19 + $0xf8] sm:$0xff] }
 0x43e   : > { %1692 = vst.msk [vmem:[%s2840_s11 + $0x68] sm:$0xff] %vm415_vm1, %v1660_v3  ;;  %v2139_v33 = vpop.f32.mrb[44].mxu1  ;;  %v2393_v3 = vld [vmem:[%s2523_s19 + $0xe8] sm:$0xff] }
 0x43f   : > { %v1593_v58 = vadd.f32 %v2139_v33, %v2833_v25  ;;  %v1584_v60 = vpop.f32.mrb[45].mxu1 }
 0x440   : > { %v1585_v61 = vadd.f32 %v2833_v25, %v1584_v60  ;;  %v2140_v4 = vpop.f32.mrb[46].mxu1 }
 0x441   : > { %v1665_v5 = vadd.f32 %v2378_v43, %v1593_v58  ;;  %v1596_v6 = vadd.f32 %v2140_v4, %v2833_v25  ;;  %v1587_v29 = vpop.f32.mrb[47].mxu1 }
 0x442   : > { %v1663_v7 = vadd.f32 %v2379_v45, %v1585_v61  ;;  %v1588_v8 = vadd.f32 %v2833_v25, %v1587_v29 }
 0x443   : > { %1697 = vst.msk [vmem:[%s2840_s11 + $0x90] sm:$0xff] %vm415_vm1, %v1665_v5  ;;  %v1666_v9 = vadd.f32 %v2380_v41, %v1596_v6 }
 0x444   : > { %1695 = vst.msk [vmem:[%s2840_s11 + $0x80] sm:$0xff] %vm415_vm1, %v1663_v7  ;;  %v1664_v27 = vadd.f32 %v2381_v10, %v1588_v8 }
 0x445   : > { %1698 = vst.msk [vmem:[%s2840_s11 + $0x98] sm:$0xff] %vm415_vm1, %v1666_v9 }
 0x446   : > { %1696 = vst.msk [vmem:[%s2840_s11 + $0x88] sm:$0xff] %vm415_vm1, %v1664_v27  ;;  %v2143_v62 = vpop.f32.mrb[48].mxu1 }
 0x447   : > { %v1609_v48 = vadd.f32 %v2143_v62, %v2833_v25  ;;  %v1600_v32 = vpop.f32.mrb[49].mxu1 }
 0x448   : > { %v1601_v63 = vadd.f32 %v2833_v25, %v1600_v32  ;;  %v2144_v11 = vpop.f32.mrb[50].mxu1 }
 0x449   : > { %v1669_v50 = vadd.f32 %v2382_v12, %v1609_v48  ;;  %v1612_v59 = vadd.f32 %v2144_v11, %v2833_v25  ;;  %v1603_v14 = vpop.f32.mrb[51].mxu1 }
 0x44a   : > { %v1667_v0 = vadd.f32 %v2383_v47, %v1601_v63  ;;  %v1604_v36 = vadd.f32 %v2833_v25, %v1603_v14 }
 0x44b   : > { %1701 = vst.msk [vmem:[%s2840_s11 + $0xb0] sm:$0xff] %vm415_vm1, %v1669_v50  ;;  %v1670_v17 = vadd.f32 %v2384_v16, %v1612_v59 }
 0x44c   : > { %1699 = vst.msk [vmem:[%s2840_s11 + $0xa0] sm:$0xff] %vm415_vm1, %v1667_v0  ;;  %v1668_v49 = vadd.f32 %v2385_v44, %v1604_v36 }
 0x44d   : > { %1702 = vst.msk [vmem:[%s2840_s11 + $0xb8] sm:$0xff] %vm415_vm1, %v1670_v17 }
 0x44e   : > { %1700 = vst.msk [vmem:[%s2840_s11 + $0xa8] sm:$0xff] %vm415_vm1, %v1668_v49  ;;  %v2147_v18 = vpop.f32.mrb[52].mxu1 }
 0x44f   : > { %v1625_v31 = vadd.f32 %v2147_v18, %v2833_v25  ;;  %v1616_v38 = vpop.f32.mrb[53].mxu1 }
 0x450   : > { %v1617_v19 = vadd.f32 %v2833_v25, %v1616_v38  ;;  %v2148_v1 = vpop.f32.mrb[54].mxu1 }
 0x451   : > { %v1673_v21 = vadd.f32 %v2386_v20, %v1625_v31  ;;  %v1628_v34 = vadd.f32 %v2148_v1, %v2833_v25  ;;  %v1619_v22 = vpop.f32.mrb[55].mxu1 }
 0x452   : > { %v1671_v13 = vadd.f32 %v2387_v23, %v1617_v19  ;;  %v1620_v15 = vadd.f32 %v2833_v25, %v1619_v22 }
 0x453   : > { %1705 = vst.msk [vmem:[%s2840_s11 + $0xd0] sm:$0xff] %vm415_vm1, %v1673_v21  ;;  %v1674_v26 = vadd.f32 %v2388_v24, %v1628_v34 }
 0x454   : > { %1703 = vst.msk [vmem:[%s2840_s11 + $0xc0] sm:$0xff] %vm415_vm1, %v1671_v13  ;;  %v1672_v30 = vadd.f32 %v2389_v37, %v1620_v15 }
 0x455   : > { %1706 = vst.msk [vmem:[%s2840_s11 + $0xd8] sm:$0xff] %vm415_vm1, %v1674_v26 }
 0x456   : > { %1704 = vst.msk [vmem:[%s2840_s11 + $0xc8] sm:$0xff] %vm415_vm1, %v1672_v30  ;;  %v2151_v35 = vpop.f32.mrb[56].mxu1 }
 0x457   : > { %v1641_v51 = vadd.f32 %v2151_v35, %v2833_v25  ;;  %v1632_v52 = vpop.f32.mrb[57].mxu1 }
 0x458   : > { %v1633_v40 = vadd.f32 %v2833_v25, %v1632_v52  ;;  %v2152_v28 = vpop.f32.mrb[58].mxu1 }
 0x459   : > { %v1677_v54 = vadd.f32 %v2390_v53, %v1641_v51  ;;  %v1644_v42 = vadd.f32 %v2152_v28, %v2833_v25  ;;  %v1635_v55 = vpop.f32.mrb[59].mxu1 }
 0x45a   : > { %v1675_v57 = vadd.f32 %v2391_v56, %v1633_v40  ;;  %v1636_v39 = vadd.f32 %v2833_v25, %v1635_v55 }
 0x45b   : > { %1709 = vst.msk [vmem:[%s2840_s11 + $0xf0] sm:$0xff] %vm415_vm1, %v1677_v54  ;;  %v1678_v46 = vadd.f32 %v2392_v2, %v1644_v42 }
 0x45c   : > { %1707 = vst.msk [vmem:[%s2840_s11 + $0xe0] sm:$0xff] %vm415_vm1, %v1675_v57  ;;  %v1676_v33 = vadd.f32 %v2393_v3, %v1636_v39 }
 0x45d   : > { %1710 = vst.msk [vmem:[%s2840_s11 + $0xf8] sm:$0xff] %vm415_vm1, %v1678_v46 }
 0x45e   : > { %1708 = vst.msk [vmem:[%s2840_s11 + $0xe8] sm:$0xff] %vm415_vm1, %v1676_v33 }
 0x45f PF: > { %s17_s28 = sadd.s32 1, %s2432_s28   ;;  %s2992_s24 = smov %s2424_s26 }
 0x460   : > { %p14_p7 = scmp.ge.s32.totalorder %s17_s28, 6   ;;  %s2993_s25 = smov %s2428_s27 }
 0x461   : > { %s2994_s26 = smov %s2997_s29  ;;  %s2995_s27 = smov %s3001_s30 }
 0x462   :  { %16 = sbr.rel (!%p14_p7) target bundleno = 3 (0x3), region = 84 }

</bundles_post_ra>
